<compile_context>
chip_gen: v7x
topology: tpu7x:2x2x1
jax: 0.10.0
libtpu: 0.0.40
codegen_flags: <defaults>
</compile_context>

<pallas_src>
import numpy as np
import jax
import jax.numpy as jnp
from jax.experimental import pallas as pl
from jax.experimental.pallas import tpu as pltpu

# ----------------------------- configuration -------------------------------
N, C_IN, H, W = 2, 4, 16, 16          # batch, in-channels, spatial
C_OUT, KH, KW, PAD = 8, 3, 3, 1       # Conv2d(4, 8, 3, padding=1)
S = H * W                             # 256 spatial positions per image
NS = N * S                            # 512 lane-stacked positions (batch in lanes)
H2, W2 = H // 2, W // 2               # after MaxPool2d(2)
FLAT = C_OUT * H2 * W2                # 512
HIDDEN = 32
HIDDEN_PAD = 128                      # lane-dense padding for Linear1/Linear2
NUM_CLASSES = 10
REF_PRECISION = jax.lax.Precision.HIGHEST  # reference only (kernel uses DEFAULT)


# --------------------------- fused forward kernel ---------------------------
def classifier_kernel(x_ref, wc_ref, bc_ref, mask_ref, w1_ref, b1_ref,
                      w2_ref, b2_ref, o_ref):
    # x_ref   : (N, C_IN, S)            NCHW input, spatial flattened into lanes
    # wc_ref  : (C_OUT, C_IN*KH*KW)     conv weight, PyTorch flatten (ci*9+kh*3+kw)
    # bc_ref  : (C_OUT, 1)
    # mask_ref: (KH*KW, N*S)            precomputed 0/1 boundary masks per tap
    # w1_ref  : (C_OUT*S, HIDDEN_PAD)   Linear1 weight with 2x2-pool lane selection
    #                                   + NCHW flatten folded in (zero rows at
    #                                   non-pooled lanes, zero cols 32..127)
    # b1_ref  : (1, HIDDEN_PAD)
    # w2_ref  : (HIDDEN_PAD, NUM_CLASSES)  Linear2 weight, transposed + zero-row pad
    # b2_ref  : (1, NUM_CLASSES)
    # o_ref   : (N, NUM_CLASSES)

    # ---- hoisted constant loads (stay register/VMEM-resident) ----
    wc = wc_ref[...]                 # (8, 36)
    bc = bc_ref[...]                 # (8, 1)
    masks = mask_ref[...]            # (9, 512)

    # ---- lane-stack the batch: channels in sublanes, batch*spatial in lanes ----
    xin = jnp.concatenate([x_ref[b] for b in range(N)], axis=1)   # (C_IN, NS)

    # ---- Conv2d 3x3 pad=1: 9 shifted VPU MACs over the stacked lane axis ----
    # Rolls wrap across image/batch boundaries only at lanes the mask zeroes.
    acc = jnp.zeros((C_OUT, NS), jnp.float32)
    for kh in range(KH):
        for kw in range(KW):
            t = kh * KW + kw
            d = (kh - PAD) * W + (kw - PAD)
            tap = xin if d == 0 else pltpu.roll(xin, shift=(-d) % NS, axis=1)
            if d != 0:                               # center tap needs no mask
                tap = tap * masks[t:t + 1, :]
            for ci in range(C_IN):
                col = ci * KH * KW + t
                acc = acc + wc[:, col:col + 1] * tap[ci:ci + 1, :]   # (C_OUT, NS)
    conv = jnp.maximum(acc + bc, 0.0)                # bias + ReLU

    # ---- MaxPool2d(2): window maxima land at lanes b*S + 2*W*py + 2*px ----
    # (all other lanes hold junk that the zero rows of w1 ignore)
    hm = jnp.maximum(conv, pltpu.roll(conv, shift=NS - 1, axis=1))
    vm = jnp.maximum(hm, pltpu.roll(hm, shift=NS - W, axis=1))       # (C_OUT, NS)

    # ---- relayout pooled activations to (N, C_OUT*S): batch rows, NCHW lanes ----
    # ~4 KB of slice+concat moves; far cheaper than 15 extra MXU push/drains.
    act = jnp.concatenate(
        [jnp.concatenate([vm[c:c + 1, b * S:(b + 1) * S] for c in range(C_OUT)],
                         axis=1)
         for b in range(N)],
        axis=0)                                                      # (N, C_OUT*S)

    # ---- Linear1 (+ ReLU): ONE lane-dense MXU matmul, default precision ----
    h = jnp.dot(act, w1_ref[...], preferred_element_type=jnp.float32) + b1_ref[...]
    h = jnp.maximum(h, 0.0)                                          # (N, HIDDEN_PAD)

    # ---- Linear2 + Softmax(dim=1) ----
    logits = jnp.dot(h, w2_ref[...],
                     preferred_element_type=jnp.float32) + b2_ref[...]  # (N, 10)
    m = jnp.max(logits, axis=1, keepdims=True)
    e = jnp.exp(logits - m)
    denom = jnp.sum(e, axis=1, keepdims=True)
    o_ref[...] = e * pl.reciprocal(denom, approx=True)


# --------------------- one-time weight prep + wrapper -----------------------
def build_classifier(params):
    """Re-layout the PyTorch-convention weights ONCE (outside jit) and return
    a jitted forward(x_nchw) that runs the single fused Pallas kernel."""
    conv_w, conv_b, lin1_w, lin1_b, lin2_w, lin2_b = (
        np.asarray(p, np.float32) for p in params)

    wc = conv_w.reshape(C_OUT, C_IN * KH * KW)          # (8, 36), col = ci*9+kh*3+kw
    bc = conv_b.reshape(C_OUT, 1)

    # 9 boundary masks (zero-padding of the 3x3 conv), tiled over the batch lanes.
    yy, xx = np.meshgrid(np.arange(H), np.arange(W), indexing="ij")
    masks = np.zeros((KH * KW, NS), np.float32)
    for kh in range(KH):
        for kw in range(KW):
            dy, dx = kh - PAD, kw - PAD
            valid = ((yy + dy >= 0) & (yy + dy < H) &
                     (xx + dx >= 0) & (xx + dx < W)).astype(np.float32).reshape(S)
            masks[kh * KW + kw] = np.tile(valid, N)

    # Fold "select pooled lane 2*W*py + 2*px" + NCHW flatten into a flat,
    # lane-dense Linear1 weight (C_OUT*S, HIDDEN_PAD); non-pooled rows and
    # columns 32..127 are zero.
    w1flat = np.zeros((C_OUT * S, HIDDEN_PAD), np.float32)
    for c in range(C_OUT):
        for py in range(H2):
            for px in range(W2):
                w1flat[c * S + 2 * W * py + 2 * px, :HIDDEN] = \
                    lin1_w[:, c * H2 * W2 + py * W2 + px]
    b1 = np.zeros((1, HIDDEN_PAD), np.float32)
    b1[0, :HIDDEN] = lin1_b

    w2pad = np.zeros((HIDDEN_PAD, NUM_CLASSES), np.float32)
    w2pad[:HIDDEN, :] = lin2_w.T
    b2 = lin2_b.reshape(1, NUM_CLASSES)

    prepped = tuple(jnp.asarray(a)
                    for a in (wc, bc, masks, w1flat, b1, w2pad, b2))

    fused = pl.pallas_call(
        classifier_kernel,
        out_shape=jax.ShapeDtypeStruct((N, NUM_CLASSES), jnp.float32),
    )

    @jax.jit
    def forward(x_nchw):
        # row-major flatten of (H, W) -> S: metadata-only, no data movement
        x = x_nchw.reshape(N, C_IN, S)
        return fused(x, *prepped)

    return forward


# ----------------------------- pure-JAX reference ----------------------------
def reference_forward(x, params):
    conv_w, conv_b, lin1_w, lin1_b, lin2_w, lin2_b = params
    y = jax.lax.conv_general_dilated(
        x, conv_w, window_strides=(1, 1), padding=((PAD, PAD), (PAD, PAD)),
        dimension_numbers=("NCHW", "OIHW", "NCHW"), precision=REF_PRECISION)
    y = jnp.maximum(y + conv_b[None, :, None, None], 0.0)
    y = jax.lax.reduce_window(y, -jnp.inf, jax.lax.max,
                              (1, 1, 2, 2), (1, 1, 2, 2), "VALID")
    flat = y.reshape(N, -1)
    h = jnp.maximum(jnp.dot(flat, lin1_w.T, precision=REF_PRECISION) + lin1_b, 0.0)
    logits = jnp.dot(h, lin2_w.T, precision=REF_PRECISION) + lin2_b
    return jax.nn.softmax(logits, axis=1)


# ---------------------------------- main -------------------------------------
if __name__ == "__main__":
    key = jax.random.PRNGKey(0)
    ks = jax.random.split(key, 7)

    conv_w = jax.random.normal(ks[0], (C_OUT, C_IN, KH, KW), jnp.float32) * 0.2
    conv_b = jax.random.normal(ks[1], (C_OUT,), jnp.float32) * 0.1
    lin1_w = jax.random.normal(ks[2], (HIDDEN, FLAT), jnp.float32) * 0.05
    lin1_b = jax.random.normal(ks[3], (HIDDEN,), jnp.float32) * 0.05
    lin2_w = jax.random.normal(ks[4], (NUM_CLASSES, HIDDEN), jnp.float32) * 0.1
    lin2_b = jax.random.normal(ks[5], (NUM_CLASSES,), jnp.float32) * 0.05
    params = (conv_w, conv_b, lin1_w, lin1_b, lin2_w, lin2_b)

    x = jax.random.normal(ks[6], (N, C_IN, H, W), jnp.float32)

    forward = build_classifier(params)
    out = jax.block_until_ready(forward(x))

    assert out.shape == (N, NUM_CLASSES)
    assert bool(jnp.all(jnp.isfinite(out)))

    ref = reference_forward(x, params)
    assert bool(jnp.allclose(out, ref, atol=1e-2)), (
        f"mismatch vs reference: max abs diff "
        f"{float(jnp.max(jnp.abs(out - ref)))}")

    print("KERNEL_OK")
</pallas_src>

<mosaic_0001>
module attributes {stable_mosaic.version = 11 : i64} {
  func.func @classifier_kernel(%arg0: memref<2x4x256xf32, #tpu.memory_space<vmem>>, %arg1: memref<8x36xf32, #tpu.memory_space<vmem>>, %arg2: memref<8x1xf32, #tpu.memory_space<vmem>>, %arg3: memref<9x512xf32, #tpu.memory_space<vmem>>, %arg4: memref<2048x128xf32, #tpu.memory_space<vmem>>, %arg5: memref<1x128xf32, #tpu.memory_space<vmem>>, %arg6: memref<128x10xf32, #tpu.memory_space<vmem>>, %arg7: memref<1x10xf32, #tpu.memory_space<vmem>>, %arg8: memref<2x10xf32, #tpu.memory_space<vmem>>) attributes {dimension_semantics = [], scalar_prefetch = 0 : i64, scratch_operands = 0 : i64, tpu.core_type = #tpu.core_type<tc>} {
    %c0 = arith.constant 0 : index
    %c0_0 = arith.constant 0 : index
    %0 = vector.load %arg1[%c0, %c0_0] : memref<8x36xf32, #tpu.memory_space<vmem>>, vector<8x36xf32>
    %c0_1 = arith.constant 0 : index
    %c0_2 = arith.constant 0 : index
    %1 = vector.load %arg2[%c0_1, %c0_2] : memref<8x1xf32, #tpu.memory_space<vmem>>, vector<8x1xf32>
    %c0_3 = arith.constant 0 : index
    %c0_4 = arith.constant 0 : index
    %2 = vector.load %arg3[%c0_3, %c0_4] : memref<9x512xf32, #tpu.memory_space<vmem>>, vector<9x512xf32>
    %c0_5 = arith.constant 0 : index
    %c0_6 = arith.constant 0 : index
    %c0_7 = arith.constant 0 : index
    %3 = vector.load %arg0[%c0_5, %c0_6, %c0_7] : memref<2x4x256xf32, #tpu.memory_space<vmem>>, vector<1x4x256xf32>
    %4 = vector.shape_cast %3 : vector<1x4x256xf32> to vector<4x256xf32>
    %c1 = arith.constant 1 : index
    %c0_8 = arith.constant 0 : index
    %c0_9 = arith.constant 0 : index
    %5 = vector.load %arg0[%c1, %c0_8, %c0_9] : memref<2x4x256xf32, #tpu.memory_space<vmem>>, vector<1x4x256xf32>
    %6 = vector.shape_cast %5 : vector<1x4x256xf32> to vector<4x256xf32>
    %7 = tpu.concatenate %4, %6 in 1 : vector<4x256xf32>, vector<4x256xf32> -> vector<4x512xf32>
    %cst = arith.constant 0.000000e+00 : f32
    %8 = vector.broadcast %cst : f32 to vector<8x512xf32>
    %c17_i32 = arith.constant 17 : i32
    %9 = tpu.dynamic_rotate %7 by %c17_i32 dim 1 : vector<4x512xf32>, i32 -> vector<4x512xf32>
    %10 = vector.extract_strided_slice %2 {offsets = [0, 0], sizes = [1, 512], strides = [1, 1]} : vector<9x512xf32> to vector<1x512xf32>
    %11 = vector.broadcast %10 : vector<1x512xf32> to vector<4x512xf32>
    %12 = arith.mulf %9, %11 : vector<4x512xf32>
    %13 = vector.extract_strided_slice %0 {offsets = [0, 0], sizes = [8, 1], strides = [1, 1]} : vector<8x36xf32> to vector<8x1xf32>
    %14 = vector.extract_strided_slice %12 {offsets = [0, 0], sizes = [1, 512], strides = [1, 1]} : vector<4x512xf32> to vector<1x512xf32>
    %15 = vector.broadcast %13 : vector<8x1xf32> to vector<8x512xf32>
    %16 = vector.broadcast %14 : vector<1x512xf32> to vector<8x512xf32>
    %17 = arith.mulf %15, %16 : vector<8x512xf32>
    %18 = arith.addf %8, %17 : vector<8x512xf32>
    %19 = vector.extract_strided_slice %0 {offsets = [0, 9], sizes = [8, 1], strides = [1, 1]} : vector<8x36xf32> to vector<8x1xf32>
    %20 = vector.extract_strided_slice %12 {offsets = [1, 0], sizes = [1, 512], strides = [1, 1]} : vector<4x512xf32> to vector<1x512xf32>
    %21 = vector.broadcast %19 : vector<8x1xf32> to vector<8x512xf32>
    %22 = vector.broadcast %20 : vector<1x512xf32> to vector<8x512xf32>
    %23 = arith.mulf %21, %22 : vector<8x512xf32>
    %24 = arith.addf %18, %23 : vector<8x512xf32>
    %25 = vector.extract_strided_slice %0 {offsets = [0, 18], sizes = [8, 1], strides = [1, 1]} : vector<8x36xf32> to vector<8x1xf32>
    %26 = vector.extract_strided_slice %12 {offsets = [2, 0], sizes = [1, 512], strides = [1, 1]} : vector<4x512xf32> to vector<1x512xf32>
    %27 = vector.broadcast %25 : vector<8x1xf32> to vector<8x512xf32>
    %28 = vector.broadcast %26 : vector<1x512xf32> to vector<8x512xf32>
    %29 = arith.mulf %27, %28 : vector<8x512xf32>
    %30 = arith.addf %24, %29 : vector<8x512xf32>
    %31 = vector.extract_strided_slice %0 {offsets = [0, 27], sizes = [8, 1], strides = [1, 1]} : vector<8x36xf32> to vector<8x1xf32>
    %32 = vector.extract_strided_slice %12 {offsets = [3, 0], sizes = [1, 512], strides = [1, 1]} : vector<4x512xf32> to vector<1x512xf32>
    %33 = vector.broadcast %31 : vector<8x1xf32> to vector<8x512xf32>
    %34 = vector.broadcast %32 : vector<1x512xf32> to vector<8x512xf32>
    %35 = arith.mulf %33, %34 : vector<8x512xf32>
    %36 = arith.addf %30, %35 : vector<8x512xf32>
    %c16_i32 = arith.constant 16 : i32
    %37 = tpu.dynamic_rotate %7 by %c16_i32 dim 1 : vector<4x512xf32>, i32 -> vector<4x512xf32>
    %38 = vector.extract_strided_slice %2 {offsets = [1, 0], sizes = [1, 512], strides = [1, 1]} : vector<9x512xf32> to vector<1x512xf32>
    %39 = vector.broadcast %38 : vector<1x512xf32> to vector<4x512xf32>
    %40 = arith.mulf %37, %39 : vector<4x512xf32>
    %41 = vector.extract_strided_slice %0 {offsets = [0, 1], sizes = [8, 1], strides = [1, 1]} : vector<8x36xf32> to vector<8x1xf32>
    %42 = vector.extract_strided_slice %40 {offsets = [0, 0], sizes = [1, 512], strides = [1, 1]} : vector<4x512xf32> to vector<1x512xf32>
    %43 = vector.broadcast %41 : vector<8x1xf32> to vector<8x512xf32>
    %44 = vector.broadcast %42 : vector<1x512xf32> to vector<8x512xf32>
    %45 = arith.mulf %43, %44 : vector<8x512xf32>
    %46 = arith.addf %36, %45 : vector<8x512xf32>
    %47 = vector.extract_strided_slice %0 {offsets = [0, 10], sizes = [8, 1], strides = [1, 1]} : vector<8x36xf32> to vector<8x1xf32>
    %48 = vector.extract_strided_slice %40 {offsets = [1, 0], sizes = [1, 512], strides = [1, 1]} : vector<4x512xf32> to vector<1x512xf32>
    %49 = vector.broadcast %47 : vector<8x1xf32> to vector<8x512xf32>
    %50 = vector.broadcast %48 : vector<1x512xf32> to vector<8x512xf32>
    %51 = arith.mulf %49, %50 : vector<8x512xf32>
    %52 = arith.addf %46, %51 : vector<8x512xf32>
    %53 = vector.extract_strided_slice %0 {offsets = [0, 19], sizes = [8, 1], strides = [1, 1]} : vector<8x36xf32> to vector<8x1xf32>
    %54 = vector.extract_strided_slice %40 {offsets = [2, 0], sizes = [1, 512], strides = [1, 1]} : vector<4x512xf32> to vector<1x512xf32>
    %55 = vector.broadcast %53 : vector<8x1xf32> to vector<8x512xf32>
    %56 = vector.broadcast %54 : vector<1x512xf32> to vector<8x512xf32>
    %57 = arith.mulf %55, %56 : vector<8x512xf32>
    %58 = arith.addf %52, %57 : vector<8x512xf32>
    %59 = vector.extract_strided_slice %0 {offsets = [0, 28], sizes = [8, 1], strides = [1, 1]} : vector<8x36xf32> to vector<8x1xf32>
    %60 = vector.extract_strided_slice %40 {offsets = [3, 0], sizes = [1, 512], strides = [1, 1]} : vector<4x512xf32> to vector<1x512xf32>
    %61 = vector.broadcast %59 : vector<8x1xf32> to vector<8x512xf32>
    %62 = vector.broadcast %60 : vector<1x512xf32> to vector<8x512xf32>
    %63 = arith.mulf %61, %62 : vector<8x512xf32>
    %64 = arith.addf %58, %63 : vector<8x512xf32>
    %c15_i32 = arith.constant 15 : i32
    %65 = tpu.dynamic_rotate %7 by %c15_i32 dim 1 : vector<4x512xf32>, i32 -> vector<4x512xf32>
    %66 = vector.extract_strided_slice %2 {offsets = [2, 0], sizes = [1, 512], strides = [1, 1]} : vector<9x512xf32> to vector<1x512xf32>
    %67 = vector.broadcast %66 : vector<1x512xf32> to vector<4x512xf32>
    %68 = arith.mulf %65, %67 : vector<4x512xf32>
    %69 = vector.extract_strided_slice %0 {offsets = [0, 2], sizes = [8, 1], strides = [1, 1]} : vector<8x36xf32> to vector<8x1xf32>
    %70 = vector.extract_strided_slice %68 {offsets = [0, 0], sizes = [1, 512], strides = [1, 1]} : vector<4x512xf32> to vector<1x512xf32>
    %71 = vector.broadcast %69 : vector<8x1xf32> to vector<8x512xf32>
    %72 = vector.broadcast %70 : vector<1x512xf32> to vector<8x512xf32>
    %73 = arith.mulf %71, %72 : vector<8x512xf32>
    %74 = arith.addf %64, %73 : vector<8x512xf32>
    %75 = vector.extract_strided_slice %0 {offsets = [0, 11], sizes = [8, 1], strides = [1, 1]} : vector<8x36xf32> to vector<8x1xf32>
    %76 = vector.extract_strided_slice %68 {offsets = [1, 0], sizes = [1, 512], strides = [1, 1]} : vector<4x512xf32> to vector<1x512xf32>
    %77 = vector.broadcast %75 : vector<8x1xf32> to vector<8x512xf32>
    %78 = vector.broadcast %76 : vector<1x512xf32> to vector<8x512xf32>
    %79 = arith.mulf %77, %78 : vector<8x512xf32>
    %80 = arith.addf %74, %79 : vector<8x512xf32>
    %81 = vector.extract_strided_slice %0 {offsets = [0, 20], sizes = [8, 1], strides = [1, 1]} : vector<8x36xf32> to vector<8x1xf32>
    %82 = vector.extract_strided_slice %68 {offsets = [2, 0], sizes = [1, 512], strides = [1, 1]} : vector<4x512xf32> to vector<1x512xf32>
    %83 = vector.broadcast %81 : vector<8x1xf32> to vector<8x512xf32>
    %84 = vector.broadcast %82 : vector<1x512xf32> to vector<8x512xf32>
    %85 = arith.mulf %83, %84 : vector<8x512xf32>
    %86 = arith.addf %80, %85 : vector<8x512xf32>
    %87 = vector.extract_strided_slice %0 {offsets = [0, 29], sizes = [8, 1], strides = [1, 1]} : vector<8x36xf32> to vector<8x1xf32>
    %88 = vector.extract_strided_slice %68 {offsets = [3, 0], sizes = [1, 512], strides = [1, 1]} : vector<4x512xf32> to vector<1x512xf32>
    %89 = vector.broadcast %87 : vector<8x1xf32> to vector<8x512xf32>
    %90 = vector.broadcast %88 : vector<1x512xf32> to vector<8x512xf32>
    %91 = arith.mulf %89, %90 : vector<8x512xf32>
    %92 = arith.addf %86, %91 : vector<8x512xf32>
    %c1_i32 = arith.constant 1 : i32
    %93 = tpu.dynamic_rotate %7 by %c1_i32 dim 1 : vector<4x512xf32>, i32 -> vector<4x512xf32>
    %94 = vector.extract_strided_slice %2 {offsets = [3, 0], sizes = [1, 512], strides = [1, 1]} : vector<9x512xf32> to vector<1x512xf32>
    %95 = vector.broadcast %94 : vector<1x512xf32> to vector<4x512xf32>
    %96 = arith.mulf %93, %95 : vector<4x512xf32>
    %97 = vector.extract_strided_slice %0 {offsets = [0, 3], sizes = [8, 1], strides = [1, 1]} : vector<8x36xf32> to vector<8x1xf32>
    %98 = vector.extract_strided_slice %96 {offsets = [0, 0], sizes = [1, 512], strides = [1, 1]} : vector<4x512xf32> to vector<1x512xf32>
    %99 = vector.broadcast %97 : vector<8x1xf32> to vector<8x512xf32>
    %100 = vector.broadcast %98 : vector<1x512xf32> to vector<8x512xf32>
    %101 = arith.mulf %99, %100 : vector<8x512xf32>
    %102 = arith.addf %92, %101 : vector<8x512xf32>
    %103 = vector.extract_strided_slice %0 {offsets = [0, 12], sizes = [8, 1], strides = [1, 1]} : vector<8x36xf32> to vector<8x1xf32>
    %104 = vector.extract_strided_slice %96 {offsets = [1, 0], sizes = [1, 512], strides = [1, 1]} : vector<4x512xf32> to vector<1x512xf32>
    %105 = vector.broadcast %103 : vector<8x1xf32> to vector<8x512xf32>
    %106 = vector.broadcast %104 : vector<1x512xf32> to vector<8x512xf32>
    %107 = arith.mulf %105, %106 : vector<8x512xf32>
    %108 = arith.addf %102, %107 : vector<8x512xf32>
    %109 = vector.extract_strided_slice %0 {offsets = [0, 21], sizes = [8, 1], strides = [1, 1]} : vector<8x36xf32> to vector<8x1xf32>
    %110 = vector.extract_strided_slice %96 {offsets = [2, 0], sizes = [1, 512], strides = [1, 1]} : vector<4x512xf32> to vector<1x512xf32>
    %111 = vector.broadcast %109 : vector<8x1xf32> to vector<8x512xf32>
    %112 = vector.broadcast %110 : vector<1x512xf32> to vector<8x512xf32>
    %113 = arith.mulf %111, %112 : vector<8x512xf32>
    %114 = arith.addf %108, %113 : vector<8x512xf32>
    %115 = vector.extract_strided_slice %0 {offsets = [0, 30], sizes = [8, 1], strides = [1, 1]} : vector<8x36xf32> to vector<8x1xf32>
    %116 = vector.extract_strided_slice %96 {offsets = [3, 0], sizes = [1, 512], strides = [1, 1]} : vector<4x512xf32> to vector<1x512xf32>
    %117 = vector.broadcast %115 : vector<8x1xf32> to vector<8x512xf32>
    %118 = vector.broadcast %116 : vector<1x512xf32> to vector<8x512xf32>
    %119 = arith.mulf %117, %118 : vector<8x512xf32>
    %120 = arith.addf %114, %119 : vector<8x512xf32>
    %121 = vector.extract_strided_slice %0 {offsets = [0, 4], sizes = [8, 1], strides = [1, 1]} : vector<8x36xf32> to vector<8x1xf32>
    %122 = vector.extract_strided_slice %7 {offsets = [0, 0], sizes = [1, 512], strides = [1, 1]} : vector<4x512xf32> to vector<1x512xf32>
    %123 = vector.broadcast %121 : vector<8x1xf32> to vector<8x512xf32>
    %124 = vector.broadcast %122 : vector<1x512xf32> to vector<8x512xf32>
    %125 = arith.mulf %123, %124 : vector<8x512xf32>
    %126 = arith.addf %120, %125 : vector<8x512xf32>
    %127 = vector.extract_strided_slice %0 {offsets = [0, 13], sizes = [8, 1], strides = [1, 1]} : vector<8x36xf32> to vector<8x1xf32>
    %128 = vector.extract_strided_slice %7 {offsets = [1, 0], sizes = [1, 512], strides = [1, 1]} : vector<4x512xf32> to vector<1x512xf32>
    %129 = vector.broadcast %127 : vector<8x1xf32> to vector<8x512xf32>
    %130 = vector.broadcast %128 : vector<1x512xf32> to vector<8x512xf32>
    %131 = arith.mulf %129, %130 : vector<8x512xf32>
    %132 = arith.addf %126, %131 : vector<8x512xf32>
    %133 = vector.extract_strided_slice %0 {offsets = [0, 22], sizes = [8, 1], strides = [1, 1]} : vector<8x36xf32> to vector<8x1xf32>
    %134 = vector.extract_strided_slice %7 {offsets = [2, 0], sizes = [1, 512], strides = [1, 1]} : vector<4x512xf32> to vector<1x512xf32>
    %135 = vector.broadcast %133 : vector<8x1xf32> to vector<8x512xf32>
    %136 = vector.broadcast %134 : vector<1x512xf32> to vector<8x512xf32>
    %137 = arith.mulf %135, %136 : vector<8x512xf32>
    %138 = arith.addf %132, %137 : vector<8x512xf32>
    %139 = vector.extract_strided_slice %0 {offsets = [0, 31], sizes = [8, 1], strides = [1, 1]} : vector<8x36xf32> to vector<8x1xf32>
    %140 = vector.extract_strided_slice %7 {offsets = [3, 0], sizes = [1, 512], strides = [1, 1]} : vector<4x512xf32> to vector<1x512xf32>
    %141 = vector.broadcast %139 : vector<8x1xf32> to vector<8x512xf32>
    %142 = vector.broadcast %140 : vector<1x512xf32> to vector<8x512xf32>
    %143 = arith.mulf %141, %142 : vector<8x512xf32>
    %144 = arith.addf %138, %143 : vector<8x512xf32>
    %c511_i32 = arith.constant 511 : i32
    %145 = tpu.dynamic_rotate %7 by %c511_i32 dim 1 : vector<4x512xf32>, i32 -> vector<4x512xf32>
    %146 = vector.extract_strided_slice %2 {offsets = [5, 0], sizes = [1, 512], strides = [1, 1]} : vector<9x512xf32> to vector<1x512xf32>
    %147 = vector.broadcast %146 : vector<1x512xf32> to vector<4x512xf32>
    %148 = arith.mulf %145, %147 : vector<4x512xf32>
    %149 = vector.extract_strided_slice %0 {offsets = [0, 5], sizes = [8, 1], strides = [1, 1]} : vector<8x36xf32> to vector<8x1xf32>
    %150 = vector.extract_strided_slice %148 {offsets = [0, 0], sizes = [1, 512], strides = [1, 1]} : vector<4x512xf32> to vector<1x512xf32>
    %151 = vector.broadcast %149 : vector<8x1xf32> to vector<8x512xf32>
    %152 = vector.broadcast %150 : vector<1x512xf32> to vector<8x512xf32>
    %153 = arith.mulf %151, %152 : vector<8x512xf32>
    %154 = arith.addf %144, %153 : vector<8x512xf32>
    %155 = vector.extract_strided_slice %0 {offsets = [0, 14], sizes = [8, 1], strides = [1, 1]} : vector<8x36xf32> to vector<8x1xf32>
    %156 = vector.extract_strided_slice %148 {offsets = [1, 0], sizes = [1, 512], strides = [1, 1]} : vector<4x512xf32> to vector<1x512xf32>
    %157 = vector.broadcast %155 : vector<8x1xf32> to vector<8x512xf32>
    %158 = vector.broadcast %156 : vector<1x512xf32> to vector<8x512xf32>
    %159 = arith.mulf %157, %158 : vector<8x512xf32>
    %160 = arith.addf %154, %159 : vector<8x512xf32>
    %161 = vector.extract_strided_slice %0 {offsets = [0, 23], sizes = [8, 1], strides = [1, 1]} : vector<8x36xf32> to vector<8x1xf32>
    %162 = vector.extract_strided_slice %148 {offsets = [2, 0], sizes = [1, 512], strides = [1, 1]} : vector<4x512xf32> to vector<1x512xf32>
    %163 = vector.broadcast %161 : vector<8x1xf32> to vector<8x512xf32>
    %164 = vector.broadcast %162 : vector<1x512xf32> to vector<8x512xf32>
    %165 = arith.mulf %163, %164 : vector<8x512xf32>
    %166 = arith.addf %160, %165 : vector<8x512xf32>
    %167 = vector.extract_strided_slice %0 {offsets = [0, 32], sizes = [8, 1], strides = [1, 1]} : vector<8x36xf32> to vector<8x1xf32>
    %168 = vector.extract_strided_slice %148 {offsets = [3, 0], sizes = [1, 512], strides = [1, 1]} : vector<4x512xf32> to vector<1x512xf32>
    %169 = vector.broadcast %167 : vector<8x1xf32> to vector<8x512xf32>
    %170 = vector.broadcast %168 : vector<1x512xf32> to vector<8x512xf32>
    %171 = arith.mulf %169, %170 : vector<8x512xf32>
    %172 = arith.addf %166, %171 : vector<8x512xf32>
    %c497_i32 = arith.constant 497 : i32
    %173 = tpu.dynamic_rotate %7 by %c497_i32 dim 1 : vector<4x512xf32>, i32 -> vector<4x512xf32>
    %174 = vector.extract_strided_slice %2 {offsets = [6, 0], sizes = [1, 512], strides = [1, 1]} : vector<9x512xf32> to vector<1x512xf32>
    %175 = vector.broadcast %174 : vector<1x512xf32> to vector<4x512xf32>
    %176 = arith.mulf %173, %175 : vector<4x512xf32>
    %177 = vector.extract_strided_slice %0 {offsets = [0, 6], sizes = [8, 1], strides = [1, 1]} : vector<8x36xf32> to vector<8x1xf32>
    %178 = vector.extract_strided_slice %176 {offsets = [0, 0], sizes = [1, 512], strides = [1, 1]} : vector<4x512xf32> to vector<1x512xf32>
    %179 = vector.broadcast %177 : vector<8x1xf32> to vector<8x512xf32>
    %180 = vector.broadcast %178 : vector<1x512xf32> to vector<8x512xf32>
    %181 = arith.mulf %179, %180 : vector<8x512xf32>
    %182 = arith.addf %172, %181 : vector<8x512xf32>
    %183 = vector.extract_strided_slice %0 {offsets = [0, 15], sizes = [8, 1], strides = [1, 1]} : vector<8x36xf32> to vector<8x1xf32>
    %184 = vector.extract_strided_slice %176 {offsets = [1, 0], sizes = [1, 512], strides = [1, 1]} : vector<4x512xf32> to vector<1x512xf32>
    %185 = vector.broadcast %183 : vector<8x1xf32> to vector<8x512xf32>
    %186 = vector.broadcast %184 : vector<1x512xf32> to vector<8x512xf32>
    %187 = arith.mulf %185, %186 : vector<8x512xf32>
    %188 = arith.addf %182, %187 : vector<8x512xf32>
    %189 = vector.extract_strided_slice %0 {offsets = [0, 24], sizes = [8, 1], strides = [1, 1]} : vector<8x36xf32> to vector<8x1xf32>
    %190 = vector.extract_strided_slice %176 {offsets = [2, 0], sizes = [1, 512], strides = [1, 1]} : vector<4x512xf32> to vector<1x512xf32>
    %191 = vector.broadcast %189 : vector<8x1xf32> to vector<8x512xf32>
    %192 = vector.broadcast %190 : vector<1x512xf32> to vector<8x512xf32>
    %193 = arith.mulf %191, %192 : vector<8x512xf32>
    %194 = arith.addf %188, %193 : vector<8x512xf32>
    %195 = vector.extract_strided_slice %0 {offsets = [0, 33], sizes = [8, 1], strides = [1, 1]} : vector<8x36xf32> to vector<8x1xf32>
    %196 = vector.extract_strided_slice %176 {offsets = [3, 0], sizes = [1, 512], strides = [1, 1]} : vector<4x512xf32> to vector<1x512xf32>
    %197 = vector.broadcast %195 : vector<8x1xf32> to vector<8x512xf32>
    %198 = vector.broadcast %196 : vector<1x512xf32> to vector<8x512xf32>
    %199 = arith.mulf %197, %198 : vector<8x512xf32>
    %200 = arith.addf %194, %199 : vector<8x512xf32>
    %c496_i32 = arith.constant 496 : i32
    %201 = tpu.dynamic_rotate %7 by %c496_i32 dim 1 : vector<4x512xf32>, i32 -> vector<4x512xf32>
    %202 = vector.extract_strided_slice %2 {offsets = [7, 0], sizes = [1, 512], strides = [1, 1]} : vector<9x512xf32> to vector<1x512xf32>
    %203 = vector.broadcast %202 : vector<1x512xf32> to vector<4x512xf32>
    %204 = arith.mulf %201, %203 : vector<4x512xf32>
    %205 = vector.extract_strided_slice %0 {offsets = [0, 7], sizes = [8, 1], strides = [1, 1]} : vector<8x36xf32> to vector<8x1xf32>
    %206 = vector.extract_strided_slice %204 {offsets = [0, 0], sizes = [1, 512], strides = [1, 1]} : vector<4x512xf32> to vector<1x512xf32>
    %207 = vector.broadcast %205 : vector<8x1xf32> to vector<8x512xf32>
    %208 = vector.broadcast %206 : vector<1x512xf32> to vector<8x512xf32>
    %209 = arith.mulf %207, %208 : vector<8x512xf32>
    %210 = arith.addf %200, %209 : vector<8x512xf32>
    %211 = vector.extract_strided_slice %0 {offsets = [0, 16], sizes = [8, 1], strides = [1, 1]} : vector<8x36xf32> to vector<8x1xf32>
    %212 = vector.extract_strided_slice %204 {offsets = [1, 0], sizes = [1, 512], strides = [1, 1]} : vector<4x512xf32> to vector<1x512xf32>
    %213 = vector.broadcast %211 : vector<8x1xf32> to vector<8x512xf32>
    %214 = vector.broadcast %212 : vector<1x512xf32> to vector<8x512xf32>
    %215 = arith.mulf %213, %214 : vector<8x512xf32>
    %216 = arith.addf %210, %215 : vector<8x512xf32>
    %217 = vector.extract_strided_slice %0 {offsets = [0, 25], sizes = [8, 1], strides = [1, 1]} : vector<8x36xf32> to vector<8x1xf32>
    %218 = vector.extract_strided_slice %204 {offsets = [2, 0], sizes = [1, 512], strides = [1, 1]} : vector<4x512xf32> to vector<1x512xf32>
    %219 = vector.broadcast %217 : vector<8x1xf32> to vector<8x512xf32>
    %220 = vector.broadcast %218 : vector<1x512xf32> to vector<8x512xf32>
    %221 = arith.mulf %219, %220 : vector<8x512xf32>
    %222 = arith.addf %216, %221 : vector<8x512xf32>
    %223 = vector.extract_strided_slice %0 {offsets = [0, 34], sizes = [8, 1], strides = [1, 1]} : vector<8x36xf32> to vector<8x1xf32>
    %224 = vector.extract_strided_slice %204 {offsets = [3, 0], sizes = [1, 512], strides = [1, 1]} : vector<4x512xf32> to vector<1x512xf32>
    %225 = vector.broadcast %223 : vector<8x1xf32> to vector<8x512xf32>
    %226 = vector.broadcast %224 : vector<1x512xf32> to vector<8x512xf32>
    %227 = arith.mulf %225, %226 : vector<8x512xf32>
    %228 = arith.addf %222, %227 : vector<8x512xf32>
    %c495_i32 = arith.constant 495 : i32
    %229 = tpu.dynamic_rotate %7 by %c495_i32 dim 1 : vector<4x512xf32>, i32 -> vector<4x512xf32>
    %230 = vector.extract_strided_slice %2 {offsets = [8, 0], sizes = [1, 512], strides = [1, 1]} : vector<9x512xf32> to vector<1x512xf32>
    %231 = vector.broadcast %230 : vector<1x512xf32> to vector<4x512xf32>
    %232 = arith.mulf %229, %231 : vector<4x512xf32>
    %233 = vector.extract_strided_slice %0 {offsets = [0, 8], sizes = [8, 1], strides = [1, 1]} : vector<8x36xf32> to vector<8x1xf32>
    %234 = vector.extract_strided_slice %232 {offsets = [0, 0], sizes = [1, 512], strides = [1, 1]} : vector<4x512xf32> to vector<1x512xf32>
    %235 = vector.broadcast %233 : vector<8x1xf32> to vector<8x512xf32>
    %236 = vector.broadcast %234 : vector<1x512xf32> to vector<8x512xf32>
    %237 = arith.mulf %235, %236 : vector<8x512xf32>
    %238 = arith.addf %228, %237 : vector<8x512xf32>
    %239 = vector.extract_strided_slice %0 {offsets = [0, 17], sizes = [8, 1], strides = [1, 1]} : vector<8x36xf32> to vector<8x1xf32>
    %240 = vector.extract_strided_slice %232 {offsets = [1, 0], sizes = [1, 512], strides = [1, 1]} : vector<4x512xf32> to vector<1x512xf32>
    %241 = vector.broadcast %239 : vector<8x1xf32> to vector<8x512xf32>
    %242 = vector.broadcast %240 : vector<1x512xf32> to vector<8x512xf32>
    %243 = arith.mulf %241, %242 : vector<8x512xf32>
    %244 = arith.addf %238, %243 : vector<8x512xf32>
    %245 = vector.extract_strided_slice %0 {offsets = [0, 26], sizes = [8, 1], strides = [1, 1]} : vector<8x36xf32> to vector<8x1xf32>
    %246 = vector.extract_strided_slice %232 {offsets = [2, 0], sizes = [1, 512], strides = [1, 1]} : vector<4x512xf32> to vector<1x512xf32>
    %247 = vector.broadcast %245 : vector<8x1xf32> to vector<8x512xf32>
    %248 = vector.broadcast %246 : vector<1x512xf32> to vector<8x512xf32>
    %249 = arith.mulf %247, %248 : vector<8x512xf32>
    %250 = arith.addf %244, %249 : vector<8x512xf32>
    %251 = vector.extract_strided_slice %0 {offsets = [0, 35], sizes = [8, 1], strides = [1, 1]} : vector<8x36xf32> to vector<8x1xf32>
    %252 = vector.extract_strided_slice %232 {offsets = [3, 0], sizes = [1, 512], strides = [1, 1]} : vector<4x512xf32> to vector<1x512xf32>
    %253 = vector.broadcast %251 : vector<8x1xf32> to vector<8x512xf32>
    %254 = vector.broadcast %252 : vector<1x512xf32> to vector<8x512xf32>
    %255 = arith.mulf %253, %254 : vector<8x512xf32>
    %256 = arith.addf %250, %255 : vector<8x512xf32>
    %257 = vector.broadcast %1 : vector<8x1xf32> to vector<8x512xf32>
    %258 = arith.addf %256, %257 : vector<8x512xf32>
    %cst_10 = arith.constant 0.000000e+00 : f32
    %259 = vector.broadcast %cst_10 : f32 to vector<8x512xf32>
    %260 = arith.maximumf %258, %259 : vector<8x512xf32>
    %c511_i32_11 = arith.constant 511 : i32
    %261 = tpu.dynamic_rotate %260 by %c511_i32_11 dim 1 : vector<8x512xf32>, i32 -> vector<8x512xf32>
    %262 = arith.maximumf %260, %261 : vector<8x512xf32>
    %c496_i32_12 = arith.constant 496 : i32
    %263 = tpu.dynamic_rotate %262 by %c496_i32_12 dim 1 : vector<8x512xf32>, i32 -> vector<8x512xf32>
    %264 = arith.maximumf %262, %263 : vector<8x512xf32>
    %265 = vector.extract_strided_slice %264 {offsets = [0, 0], sizes = [1, 256], strides = [1, 1]} : vector<8x512xf32> to vector<1x256xf32>
    %266 = vector.extract_strided_slice %264 {offsets = [1, 0], sizes = [1, 256], strides = [1, 1]} : vector<8x512xf32> to vector<1x256xf32>
    %267 = vector.extract_strided_slice %264 {offsets = [2, 0], sizes = [1, 256], strides = [1, 1]} : vector<8x512xf32> to vector<1x256xf32>
    %268 = vector.extract_strided_slice %264 {offsets = [3, 0], sizes = [1, 256], strides = [1, 1]} : vector<8x512xf32> to vector<1x256xf32>
    %269 = vector.extract_strided_slice %264 {offsets = [4, 0], sizes = [1, 256], strides = [1, 1]} : vector<8x512xf32> to vector<1x256xf32>
    %270 = vector.extract_strided_slice %264 {offsets = [5, 0], sizes = [1, 256], strides = [1, 1]} : vector<8x512xf32> to vector<1x256xf32>
    %271 = vector.extract_strided_slice %264 {offsets = [6, 0], sizes = [1, 256], strides = [1, 1]} : vector<8x512xf32> to vector<1x256xf32>
    %272 = vector.extract_strided_slice %264 {offsets = [7, 0], sizes = [1, 256], strides = [1, 1]} : vector<8x512xf32> to vector<1x256xf32>
    %273 = tpu.concatenate %265, %266, %267, %268, %269, %270, %271, %272 in 1 : vector<1x256xf32>, vector<1x256xf32>, vector<1x256xf32>, vector<1x256xf32>, vector<1x256xf32>, vector<1x256xf32>, vector<1x256xf32>, vector<1x256xf32> -> vector<1x2048xf32>
    %274 = vector.extract_strided_slice %264 {offsets = [0, 256], sizes = [1, 256], strides = [1, 1]} : vector<8x512xf32> to vector<1x256xf32>
    %275 = vector.extract_strided_slice %264 {offsets = [1, 256], sizes = [1, 256], strides = [1, 1]} : vector<8x512xf32> to vector<1x256xf32>
    %276 = vector.extract_strided_slice %264 {offsets = [2, 256], sizes = [1, 256], strides = [1, 1]} : vector<8x512xf32> to vector<1x256xf32>
    %277 = vector.extract_strided_slice %264 {offsets = [3, 256], sizes = [1, 256], strides = [1, 1]} : vector<8x512xf32> to vector<1x256xf32>
    %278 = vector.extract_strided_slice %264 {offsets = [4, 256], sizes = [1, 256], strides = [1, 1]} : vector<8x512xf32> to vector<1x256xf32>
    %279 = vector.extract_strided_slice %264 {offsets = [5, 256], sizes = [1, 256], strides = [1, 1]} : vector<8x512xf32> to vector<1x256xf32>
    %280 = vector.extract_strided_slice %264 {offsets = [6, 256], sizes = [1, 256], strides = [1, 1]} : vector<8x512xf32> to vector<1x256xf32>
    %281 = vector.extract_strided_slice %264 {offsets = [7, 256], sizes = [1, 256], strides = [1, 1]} : vector<8x512xf32> to vector<1x256xf32>
    %282 = tpu.concatenate %274, %275, %276, %277, %278, %279, %280, %281 in 1 : vector<1x256xf32>, vector<1x256xf32>, vector<1x256xf32>, vector<1x256xf32>, vector<1x256xf32>, vector<1x256xf32>, vector<1x256xf32>, vector<1x256xf32> -> vector<1x2048xf32>
    %283 = tpu.concatenate %273, %282 in 0 : vector<1x2048xf32>, vector<1x2048xf32> -> vector<2x2048xf32>
    %c0_13 = arith.constant 0 : index
    %c0_14 = arith.constant 0 : index
    %284 = vector.load %arg4[%c0_13, %c0_14] : memref<2048x128xf32, #tpu.memory_space<vmem>>, vector<2048x128xf32>
    %cst_15 = arith.constant dense<0.000000e+00> : vector<2x128xf32>
    %285 = tpu.matmul %283, %284, %cst_15 {dimension_numbers = #tpu.dot_dimension_numbers<[1], [0], [0], [1], [0, 0, 1, 1], [], []>} : vector<2x2048xf32>, vector<2048x128xf32>, vector<2x128xf32> -> vector<2x128xf32>
    %c0_16 = arith.constant 0 : index
    %c0_17 = arith.constant 0 : index
    %286 = vector.load %arg5[%c0_16, %c0_17] : memref<1x128xf32, #tpu.memory_space<vmem>>, vector<1x128xf32>
    %287 = vector.broadcast %286 : vector<1x128xf32> to vector<2x128xf32>
    %288 = arith.addf %285, %287 : vector<2x128xf32>
    %cst_18 = arith.constant 0.000000e+00 : f32
    %289 = vector.broadcast %cst_18 : f32 to vector<2x128xf32>
    %290 = arith.maximumf %288, %289 : vector<2x128xf32>
    %c0_19 = arith.constant 0 : index
    %c0_20 = arith.constant 0 : index
    %291 = vector.load %arg6[%c0_19, %c0_20] : memref<128x10xf32, #tpu.memory_space<vmem>>, vector<128x10xf32>
    %cst_21 = arith.constant dense<0.000000e+00> : vector<2x10xf32>
    %292 = tpu.matmul %290, %291, %cst_21 {dimension_numbers = #tpu.dot_dimension_numbers<[1], [0], [0], [1], [0, 0, 1, 1], [], []>} : vector<2x128xf32>, vector<128x10xf32>, vector<2x10xf32> -> vector<2x10xf32>
    %c0_22 = arith.constant 0 : index
    %c0_23 = arith.constant 0 : index
    %293 = vector.load %arg7[%c0_22, %c0_23] : memref<1x10xf32, #tpu.memory_space<vmem>>, vector<1x10xf32>
    %294 = vector.broadcast %293 : vector<1x10xf32> to vector<2x10xf32>
    %295 = arith.addf %292, %294 : vector<2x10xf32>
    %cst_24 = arith.constant dense<0xFF800000> : vector<2xf32>
    %296 = vector.multi_reduction <maximumf>, %295, %cst_24 [1] : vector<2x10xf32> to vector<2xf32>
    %297 = vector.shape_cast %296 : vector<2xf32> to vector<2x1xf32>
    %298 = vector.broadcast %297 : vector<2x1xf32> to vector<2x10xf32>
    %299 = arith.subf %295, %298 : vector<2x10xf32>
    %300 = math.exp %299 : vector<2x10xf32>
    %cst_25 = arith.constant dense<0.000000e+00> : vector<2xf32>
    %301 = vector.multi_reduction <add>, %300, %cst_25 [1] : vector<2x10xf32> to vector<2xf32>
    %302 = vector.shape_cast %301 : vector<2xf32> to vector<2x1xf32>
    %303 = tpu.reciprocal %302 {approx = true} : vector<2x1xf32> -> vector<2x1xf32>
    %304 = vector.broadcast %303 : vector<2x1xf32> to vector<2x10xf32>
    %305 = arith.mulf %300, %304 : vector<2x10xf32>
    %c0_26 = arith.constant 0 : index
    %c0_27 = arith.constant 0 : index
    %306 = vector.load %arg8[%c0_26, %c0_27] : memref<2x10xf32, #tpu.memory_space<vmem>>, vector<2x10xf32>
    tpu.vector_store %arg8[%c0_26, %c0_27], %305 {strides = array<i32>} : memref<2x10xf32, #tpu.memory_space<vmem>>, vector<2x10xf32>,
    return
  }
}

</mosaic_0001>

<bundles_post_ra>
// kernel: forward.1
= control target key start
LH: loop header
LB: loop body
LE: loop exit
PB: predicated region body
PF: predicated region fallthrough
CT: control target
= control target key end

     0   :  { %13 = vsyncpa [#allocation3], 0  ;;  %s4213_s0 = inlined_call_operand.vmem [shape: f32[2,4,256], index: 0, kind: input, shape index: {}]   ;;  %s4214_s1 = inlined_call_operand.vmem [shape: f32[8,36], index: 1, kind: input, shape index: {}]   ;;  %s4215_s2 = inlined_call_operand.vmem [shape: f32[8,1], index: 2, kind: input, shape index: {}]   ;;  %s4216_s3 = inlined_call_operand.hbm [shape: f32[9,512], index: 3, kind: input, shape index: {}]   ;;  %s4217_s4 = inlined_call_operand.hbm [shape: f32[2048,128], index: 4, kind: input, shape index: {}]   ;;  %s4218_s5 = inlined_call_operand.vmem [shape: f32[1,128], index: 5, kind: input, shape index: {}]   ;;  %s4219_s6 = inlined_call_operand.vmem [shape: f32[128,10], index: 6, kind: input, shape index: {}]   ;;  %s4220_s7 = inlined_call_operand.vmem [shape: f32[1,10], index: 7, kind: input, shape index: {}]   ;;  %s4221_s8 = inlined_call_operand.hbm [shape: f32[2,10], index: 8, kind: output, shape index: {}]  }
   0x1   :  { %14 = vsyncpa [#allocation6], 0 }
   0x2   :  { %15 = vsyncpa [#allocation4], 0  ;;  %s3256_s27 = smov [#allocation2]   ;;  %s3184_s9 = scalar_lea.hbm %s4216_s3, 1024 }
   0x3   :  { %s27_s28 = sshll.u32 %s3256_s27, 4  ;;  %p3185_p0 = scmp.ne.s32.totalorder %s4216_s3, %s3184_s9  ;;  %s28_s28 = int_to_ptr.vmem [resolvable:$true] %s27_s28 }
   0x4   :  { %p3188_p1 = scmp.lt.u32.totalorder %s3184_s9, %s4216_s3 }
   0x6   :  { %p3190_p2 = pnand %p3188_p1, %p3185_p0 }
   0x8   :  { %3193 = shalt.err (!%p3190_p2)
}
   0x9   :  { %s3194_s14 = scalar_lea.vmem %s28_s28, 1024  ;;  %p3199_p4 = scmp.lt.s32.totalorder %s28_s28, %s28_s28 }
   0xa   :  { %p3195_p3 = scmp.ne.s32.totalorder %s28_s28, %s3194_s14  ;;  %p3200_p5 = scmp.lt.s32.totalorder %s3194_s14, %s3194_s14 }
   0xc   :  { %p3201_p6 = por %p3200_p5, %p3199_p4 }
   0xe   :  { %p3202_p7 = pnand %p3201_p6, %p3195_p3 }
  0x10   :  { %3205 = shalt.err (!%p3202_p7)
}
  0x11   :  { %s3257_s15 = smov 512   ;;  %s3258_s16 = smov 32  }
  0x12   :  { %33 = dma.hbm_to_vmem [thread:$0]  %s4216_s3, 1024, %s28_s28, [#allocation3], %s3257_s15, %s3257_s15, %s3258_s16  }
  0x13   :  { %s3259_s19 = smov [#allocation5]   ;;  %s3206_s23 = scalar_lea.hbm %s4217_s4, 32768 }
  0x14   :  { %s39_s20 = sshll.u32 %s3259_s19, 4  ;;  %p3207_p8 = scmp.ne.s32.totalorder %s4217_s4, %s3206_s23  ;;  %s40_s20 = int_to_ptr.vmem [resolvable:$true] %s39_s20 }
  0x15   :  { %p3210_p9 = scmp.lt.u32.totalorder %s3206_s23, %s4217_s4 }
  0x17   :  { %p3212_p10 = pnand %p3210_p9, %p3207_p8 }
  0x19   :  { %3215 = shalt.err (!%p3212_p10)
}
  0x1a   :  { %s3216_s29 = scalar_lea.vmem %s40_s20, 32768  ;;  %p3221_p12 = scmp.lt.s32.totalorder %s40_s20, %s40_s20 }
  0x1b   :  { %p3217_p11 = scmp.ne.s32.totalorder %s40_s20, %s3216_s29  ;;  %p3222_p13 = scmp.lt.s32.totalorder %s3216_s29, %s3216_s29 }
  0x1d   :  { %p3223_p0 = por %p3222_p13, %p3221_p12 }
  0x1f   :  { %p3224_p1 = pnand %p3223_p0, %p3217_p11 }
  0x21   :  { %3227 = shalt.err (!%p3224_p1)
}
  0x22   :  { %s3260_s3 = smov 128   ;;  %s3261_s28 = smov 8  }
  0x23   :  { %45 = dma.hbm_to_vmem [thread:$0]  %s4217_s4, 32768, %s40_s20, [#allocation6], %s3260_s3, %s3260_s3, %s3261_s28  }
  0x24   :  { %3250 = dma.done.wait [#allocation3], 1024  }
  0x25   :  { %3251 = vsyncadd [#allocation3], 4294966272 }
  0x26   :  { %3252 = dma.done.wait [#allocation6], 32768  }
  0x27   :  { %3253 = vsyncadd [#allocation6], 4294934528  ;;  %v3262_v0 = vmov 0   ;;  %v3263_v1 = vmov 18   ;;  %v3383_v2 = vld [vmem:[%s4213_s0] sm:$0xff]  ;;  %s3264_s4 = smov 17   ;;  %v85_v36 = vlaneseq }
  0x28   :  { %3121 = vset.pattern.permute.xlu0 %v3262_v0  ;;  %3123 = vset.pattern.permute.xlu1 %v3263_v1  ;;  %v3388_v3 = vld [vmem:[%s4214_s1] sm:$0xff]  ;;  %v3395_v4 = vld [vmem:[%s4213_s0 + $0x8] sm:$0xff]  ;;  %v3265_v5 = vmov 9   ;;  %v3400_v6 = vcombine.high %v3383_v2, %v3383_v2  ;;  %v3266_v8 = vmov 27   ;;  %v3267_v9 = vmov 1   ;;  %s3268_s0 = smov 16  }
  0x29   :  { %77 = vrot.lane.b32.xlu1 %v3383_v2, %s3264_s4  ;;  %114 = vperm.xlu0 %3121, %v3388_v3   ;;  %v3405_v7 = vcombine.high %v3395_v4, %v3395_v4  ;;  %v3269_v10 = vmov 19   ;;  %v3270_v11 = vmov 10   ;;  %s3271_s1 = smov 15   ;;  %v3272_v12 = vmov 11   ;;  %s3277_s16 = smov 1   ;;  %v59_v34 = vld [vmem:[%s4215_s2] sm:$0xff] }
  0x2a   :  { %v3273_v13 = vmov 28   ;;  %v3274_v14 = vmov 2   ;;  %v3275_v15 = vmov 3   ;;  %v3276_v16 = vmov 20   ;;  %s3283_s17 = smov 127   ;;  %s3286_s18 = smov 113  }
  0x2b   :  { %v3278_v17 = vmov 12   ;;  %v3279_v18 = vmov 4   ;;  %v3280_v19 = vmov 29   ;;  %v3281_v20 = vmov 31   ;;  %s3292_s19 = smov 112   ;;  %s3296_s20 = smov 111  }
  0x2c   :  { %v3282_v21 = vmov 21   ;;  %v3284_v22 = vmov 23   ;;  %v3285_v23 = vmov 30   ;;  %v3287_v24 = vmov 15   ;;  %v3479_v44 = vld [vmem:[#allocation2 + $0x8] sm:$0xff]  ;;  %v3481_v45 = vld [vmem:[#allocation2 + $0x10] sm:$0xff] }
  0x2d   :  { %81 = vrot.lane.b32.xlu1 %v3395_v4, %s3264_s4  ;;  %3122 = vset.pattern.permute.xlu0 %v3265_v5  ;;  %v3288_v25 = vmov 13   ;;  %v3289_v26 = vmov 22   ;;  %v3290_v27 = vmov 7   ;;  %v3291_v28 = vmov 5   ;;  %v3502_v55 = vld [vmem:[#allocation2] sm:$0xff]  ;;  %v3504_v56 = vld [vmem:[#allocation2 + $0x18] sm:$0xff] }
  0x2e   :  { %142 = vperm.xlu0 %3122, %v3388_v3   ;;  %v3293_v29 = vmov 16   ;;  %v3294_v30 = vmov 14   ;;  %v3295_v31 = vmov 8   ;;  %v3297_v32 = vmov 17   ;;  %s3309_s3 = smov [#allocation7]  }
  0x2f   :  { %v3298_v33 = vmov 32   ;;  %v3299_v35 = vmov 6   ;;  %v3469_v38 = vand.u32 127, %v85_v36  ;;  %v3471_v39 = vshrl.u32 %v85_v36, 7  ;;  %s2426_s28 = sshll.u32 %s3309_s3, 4  ;;  %s2427_s28 = int_to_ptr.vmem [resolvable:$true] %s2426_s28 }
  0x30   :  { %v3300_v41 = vmov 24   ;;  %v3301_v54 = vmov 33   ;;  %vm1473_vm8 = vcmask 1040384   ;;  %vm3307_vm9 = vmmov 0   ;;  %p3233_p3 = scmp.lt.s32.totalorder %s2427_s28, %s2427_s28 }
  0x31   :  { %79 = vrot.lane.b32.xlu1 %v3400_v6, %s3264_s4  ;;  %vm87_vm0 = vcmp.lt.s32.totalorder %v3469_v38, 17  ;;  %v3477_v42 = vsub.s32 0, %v3471_v39  ;;  %v3499_v53 = vsub.s32 1, %v3471_v39  ;;  %vm233_vm1 = vcmp.lt.s32.totalorder %v3469_v38, 16 }
  0x32   :  { %83 = vrot.lane.b32.xlu0 %v3405_v7, %s3264_s4  ;;  %vm378_vm2 = vcmp.lt.s32.totalorder %v3469_v38, 15  ;;  %vm523_vm3 = vcmp.lt.s32.totalorder %v3469_v38, 1  ;;  %vm780_vm4 = vcmp.lt.s32.totalorder %v3469_v38, 127  ;;  %vm925_vm5 = vcmp.lt.s32.totalorder %v3469_v38, 113 }
  0x33   :  { %3124 = vset.pattern.permute.xlu0 %v3266_v8  ;;  %v99_v48 = vrot.slane %v3479_v44, %v3477_v42  ;;  %v103_v49 = vrot.slane %v3481_v45, %v3477_v42  ;;  %v95_v62 = vrot.slane %v3502_v55, %v3477_v42  ;;  %v107_v63 = vrot.slane %v3504_v56, %v3477_v42 }
  0x34   :  { %v3524_v8 = vsub.s32 3, %v3471_v39  ;;  %vm1070_vm6 = vcmp.lt.s32.totalorder %v3469_v38, 112  ;;  %vm1215_vm7 = vcmp.lt.s32.totalorder %v3469_v38, 111  ;;  %vm2407_vm10 = vcmask 74752  }
  0x35   :  { %170 = vperm.xlu1 %3123, %v3388_v3  }
  0x36   :  { %198 = vperm.xlu0 %3124, %v3388_v3  }
  0x39   :  { %3125 = vset.pattern.permute.xlu1 %v3267_v9 }
  0x3a   :  { %259 = vperm.xlu1 %3125, %v3388_v3   ;;  %227 = vrot.lane.b32.xlu0 %v3400_v6, %s3268_s0 }
  0x3b   :  { %3127 = vset.pattern.permute.xlu0 %v3269_v10  ;;  %v3302_v10 = vmov 25  }
  0x3e   :  { %225 = vrot.lane.b32.xlu1 %v3383_v2, %s3268_s0  ;;  %231 = vrot.lane.b32.xlu0 %v3405_v7, %s3268_s0 }
  0x3f   :  { %3126 = vset.pattern.permute.xlu1 %v3270_v11 }
  0x42   :  { %229 = vrot.lane.b32.xlu1 %v3395_v4, %s3268_s0  ;;  %315 = vperm.xlu0 %3127, %v3388_v3  }
  0x46   :  { %287 = vperm.xlu1 %3126, %v3388_v3   ;;  %370 = vrot.lane.b32.xlu0 %v3383_v2, %s3271_s1 }
  0x47   :  { %3130 = vset.pattern.permute.xlu0 %v3272_v12 }
  0x4a   :  { %3128 = vset.pattern.permute.xlu1 %v3273_v13  ;;  %374 = vrot.lane.b32.xlu0 %v3395_v4, %s3271_s1 }
  0x4b   :  { %343 = vperm.xlu1 %3128, %v3388_v3  }
  0x4e   :  { %432 = vperm.xlu0 %3130, %v3388_v3  }
  0x4f   :  { %3129 = vset.pattern.permute.xlu1 %v3274_v14 }
  0x50   :  { %404 = vperm.xlu1 %3129, %v3388_v3  }
  0x52   :  { %3133 = vset.pattern.permute.xlu0 %v3275_v15 }
  0x53   :  { %549 = vperm.xlu0 %3133, %v3388_v3  }
  0x54   :  { %372 = vrot.lane.b32.xlu1 %v3400_v6, %s3271_s1 }
  0x55   :  { %3131 = vset.pattern.permute.xlu1 %v3276_v16 }
  0x57   :  { %519 = vrot.lane.b32.xlu0 %v3395_v4, %s3277_s16 }
  0x58   :  { %376 = vrot.lane.b32.xlu1 %v3405_v7, %s3271_s1  ;;  %3134 = vset.pattern.permute.xlu0 %v3278_v17 }
  0x5b   :  { %577 = vperm.xlu0 %3134, %v3388_v3  }
  0x5c   :  { %460 = vperm.xlu1 %3131, %v3388_v3  }
  0x5f   :  { %3137 = vset.pattern.permute.xlu0 %v3279_v18 }
  0x60   :  { %3132 = vset.pattern.permute.xlu1 %v3280_v19  ;;  %661 = vperm.xlu0 %3137, %v3388_v3  }
  0x61   :  { %488 = vperm.xlu1 %3132, %v3388_v3  }
  0x64   :  { %3140 = vset.pattern.permute.xlu0 %v3281_v20 }
  0x65   :  { %515 = vrot.lane.b32.xlu1 %v3383_v2, %s3277_s16  ;;  %745 = vperm.xlu0 %3140, %v3388_v3  }
  0x66   :  { %3135 = vset.pattern.permute.xlu1 %v3282_v21 }
  0x69   :  { %517 = vrot.lane.b32.xlu1 %v3400_v6, %s3277_s16  ;;  %774 = vrot.lane.b32.xlu0 %v3400_v6, %s3283_s17 }
  0x6a   :  { %3143 = vset.pattern.permute.xlu0 %v3284_v22 }
  0x6d   :  { %521 = vrot.lane.b32.xlu1 %v3405_v7, %s3277_s16  ;;  %778 = vrot.lane.b32.xlu0 %v3405_v7, %s3283_s17 }
  0x71   :  { %605 = vperm.xlu1 %3135, %v3388_v3   ;;  %862 = vperm.xlu0 %3143, %v3388_v3  }
  0x75   :  { %3136 = vset.pattern.permute.xlu1 %v3285_v23  ;;  %917 = vrot.lane.b32.xlu0 %v3383_v2, %s3286_s18 }
  0x76   :  { %633 = vperm.xlu1 %3136, %v3388_v3   ;;  %3146 = vset.pattern.permute.xlu0 %v3287_v24 }
  0x79   :  { %921 = vrot.lane.b32.xlu0 %v3395_v4, %s3286_s18 }
  0x7a   :  { %3138 = vset.pattern.permute.xlu1 %v3288_v25 }
  0x7b   :  { %689 = vperm.xlu1 %3138, %v3388_v3  }
  0x7d   :  { %979 = vperm.xlu0 %3146, %v3388_v3  }
  0x7f   :  { %3139 = vset.pattern.permute.xlu1 %v3289_v26 }
  0x80   :  { %717 = vperm.xlu1 %3139, %v3388_v3  }
  0x81   :  { %3149 = vset.pattern.permute.xlu0 %v3290_v27 }
  0x82   :  { %1096 = vperm.xlu0 %3149, %v3388_v3  }
  0x84   :  { %3141 = vset.pattern.permute.xlu1 %v3291_v28 }
  0x85   :  { %806 = vperm.xlu1 %3141, %v3388_v3  }
  0x86   :  { %1066 = vrot.lane.b32.xlu0 %v3395_v4, %s3292_s19 }
  0x87   :  { %3150 = vset.pattern.permute.xlu0 %v3293_v29 }
  0x89   :  { %772 = vrot.lane.b32.xlu1 %v3383_v2, %s3283_s17 }
  0x8a   :  { %3142 = vset.pattern.permute.xlu1 %v3294_v30  ;;  %1124 = vperm.xlu0 %3150, %v3388_v3  }
  0x8d   :  { %776 = vrot.lane.b32.xlu1 %v3395_v4, %s3283_s17 }
  0x8e   :  { %3153 = vset.pattern.permute.xlu0 %v3295_v31 }
  0x8f   :  { %1241 = vperm.xlu0 %3153, %v3388_v3  }
  0x91   :  { %834 = vperm.xlu1 %3142, %v3388_v3  }
  0x93   :  { %1211 = vrot.lane.b32.xlu0 %v3395_v4, %s3296_s20 }
  0x94   :  { %3154 = vset.pattern.permute.xlu0 %v3297_v32 }
  0x95   :  { %3144 = vset.pattern.permute.xlu1 %v3298_v33 }
  0x96   :  { %890 = vperm.xlu1 %3144, %v3388_v3  }
  0x97   :  { %1269 = vperm.xlu0 %3154, %v3388_v3  }
  0x9a   :  { %3145 = vset.pattern.permute.xlu1 %v3299_v35 }
  0x9b   :  { %v78_v37 = vpop.permute.xlu1 %77  ;;  %951 = vperm.xlu1 %3145, %v3388_v3   ;;  %3157 = vset.pattern.permute.xlu0 %v3262_v0  ;;  %v3519_v0 = vsub.s32 2, %v3471_v39 }
  0x9c   :  { %1354 = vperm.xlu0 %3157, %v59_v34  }
  0x9f   :  { %v82_v40 = vpop.permute.xlu1 %81  ;;  %919 = vrot.lane.b32.xlu1 %v3400_v6, %s3286_s18 }
  0xa0   :  { %3147 = vset.pattern.permute.xlu1 %v3300_v41 }
  0xa3   :  { %v80_v43 = vpop.permute.xlu1 %79  ;;  %923 = vrot.lane.b32.xlu1 %v3405_v7, %s3286_s18 }
  0xa4   :  { %v89_v46 = vsel %vm87_vm0, %v80_v43, %v82_v40  ;;  %v90_v47 = vsel %vm87_vm0, %v78_v37, %v80_v43 }
  0xa5   :  { %v3494_v51 = vmul.f32 %v99_v48, %v90_v47  ;;  %v3496_v52 = vmul.f32 %v103_v49, %v89_v46 }
  0xa7   :  { %1007 = vperm.xlu1 %3147, %v3388_v3   ;;  %v124_v58 = vrot.slane %v3494_v51, %v3477_v42  ;;  %v128_v59 = vrot.slane %v3496_v52, %v3477_v42  ;;  %v152_v60 = vrot.slane %v3494_v51, %v3499_v53  ;;  %v156_v61 = vrot.slane %v3496_v52, %v3499_v53 }
  0xa8   :  { %v115_v50 = vpop.permute.xlu0 %114  ;;  %v180_v17 = vrot.slane %v3494_v51, %v3519_v0  ;;  %v184_v18 = vrot.slane %v3496_v52, %v3519_v0  ;;  %v208_v22 = vrot.slane %v3494_v51, %v3524_v8  ;;  %v212_v23 = vrot.slane %v3496_v52, %v3524_v8 }
  0xa9   :  { %v134_v11 = vmul.f32 %v124_v58, %v115_v50  ;;  %v135_v12 = vmul.f32 %v128_v59, %v115_v50 }
  0xab   :  { %3148 = vset.pattern.permute.xlu1 %v3301_v54 }
  0xac   :  { %1035 = vperm.xlu1 %3148, %v3388_v3  }
  0xad   :  { %v143_v57 = vpop.permute.xlu0 %142 }
  0xae   :  { %v162_v1 = vmul.f32 %v152_v60, %v143_v57  ;;  %v163_v5 = vmul.f32 %v156_v61, %v143_v57 }
  0xb0   :  { %1062 = vrot.lane.b32.xlu1 %v3383_v2, %s3292_s19  ;;  %v166_v19 = vadd.f32 %v162_v1, %v134_v11  ;;  %v167_v20 = vadd.f32 %v163_v5, %v135_v12 }
  0xb1   :  { %v84_v9 = vpop.permute.xlu0 %83  ;;  %3151 = vset.pattern.permute.xlu1 %v3302_v10 }
  0xb2   :  { %v88_v13 = vsel %vm87_vm0, %v82_v40, %v84_v9  ;;  %v91_v14 = vsel %vm87_vm0, %v84_v9, %v78_v37 }
  0xb3   :  { %v108_v15 = vmul.f32 %v95_v62, %v91_v14  ;;  %v111_v16 = vmul.f32 %v107_v63, %v88_v13 }
  0xb4   :  { %1064 = vrot.lane.b32.xlu1 %v3400_v6, %s3292_s19  ;;  %v171_v21 = vpop.permute.xlu1 %170 }
  0xb5   :  { %v120_v24 = vrot.slane %v108_v15, %v3477_v42  ;;  %v132_v25 = vrot.slane %v111_v16, %v3477_v42  ;;  %v148_v26 = vrot.slane %v108_v15, %v3499_v53  ;;  %v160_v27 = vrot.slane %v111_v16, %v3499_v53  ;;  %v199_v28 = vpop.permute.xlu0 %198 }
  0xb6   :  { %v176_v29 = vrot.slane %v108_v15, %v3519_v0  ;;  %v188_v30 = vrot.slane %v111_v16, %v3519_v0  ;;  %v190_v31 = vmul.f32 %v180_v17, %v171_v21  ;;  %v191_v32 = vmul.f32 %v184_v18, %v171_v21 }
  0xb7   :  { %v133_v33 = vmul.f32 %v120_v24, %v115_v50  ;;  %v136_v34 = vmul.f32 %v132_v25, %v115_v50  ;;  %v161_v35 = vmul.f32 %v148_v26, %v143_v57  ;;  %v164_v36 = vmul.f32 %v160_v27, %v143_v57 }
  0xb8   :  { %v189_v37 = vmul.f32 %v176_v29, %v171_v21  ;;  %v192_v40 = vmul.f32 %v188_v30, %v171_v21  ;;  %v194_v41 = vadd.f32 %v190_v31, %v166_v19  ;;  %v195_v43 = vadd.f32 %v191_v32, %v167_v20  ;;  %1068 = vrot.lane.b32.xlu1 %v3405_v7, %s3292_s19 }
  0xb9   :  { %v165_v46 = vadd.f32 %v161_v35, %v133_v33  ;;  %v168_v47 = vadd.f32 %v164_v36, %v136_v34  ;;  %v204_v48 = vrot.slane %v108_v15, %v3524_v8  ;;  %v216_v49 = vrot.slane %v111_v16, %v3524_v8  ;;  %v260_v51 = vpop.permute.xlu1 %259  ;;  %v228_v52 = vpop.permute.xlu0 %227 }
  0xba   :  { %v218_v54 = vmul.f32 %v208_v22, %v199_v28  ;;  %v219_v58 = vmul.f32 %v212_v23, %v199_v28  ;;  %v245_v50 = vrot.slane %v3479_v44, %v3499_v53  ;;  %v241_v57 = vrot.slane %v3502_v55, %v3499_v53 }
  0xbb   :  { %v193_v59 = vadd.f32 %v189_v37, %v165_v46  ;;  %v196_v60 = vadd.f32 %v192_v40, %v168_v47  ;;  %v217_v61 = vmul.f32 %v204_v48, %v199_v28  ;;  %v220_v62 = vmul.f32 %v216_v49, %v199_v28 }
  0xbc   :  { %v222_v63 = vadd.f32 %v218_v54, %v194_v41  ;;  %v223_v1 = vadd.f32 %v219_v58, %v195_v43  ;;  %1152 = vperm.xlu1 %3151, %v3388_v3   ;;  %v249_v16 = vrot.slane %v3481_v45, %v3499_v53  ;;  %v253_v17 = vrot.slane %v3504_v56, %v3499_v53 }
  0xbd   :  { %v221_v5 = vadd.f32 %v217_v61, %v193_v59  ;;  %v224_v9 = vadd.f32 %v220_v62, %v196_v60  ;;  %v226_v10 = vpop.permute.xlu1 %225  ;;  %v232_v11 = vpop.permute.xlu0 %231  ;;  %v3303_v18 = vmov 34   ;;  %v3304_v49 = vmov 26  }
  0xbe   :  { %v236_v12 = vsel %vm233_vm1, %v226_v10, %v228_v52  ;;  %v237_v13 = vsel %vm233_vm1, %v232_v11, %v226_v10 }
  0xbf   :  { %v255_v14 = vmul.f32 %v245_v50, %v236_v12  ;;  %v254_v15 = vmul.f32 %v241_v57, %v237_v13 }
  0xc0   :  { %3152 = vset.pattern.permute.xlu1 %v3303_v18 }
  0xc1   :  { %v269_v19 = vrot.slane %v255_v14, %v3477_v42  ;;  %v265_v20 = vrot.slane %v254_v15, %v3477_v42  ;;  %1180 = vperm.xlu1 %3152, %v3388_v3   ;;  %v230_v21 = vpop.permute.xlu1 %229  ;;  %v321_v22 = vrot.slane %v254_v15, %v3519_v0  ;;  %v325_v23 = vrot.slane %v255_v14, %v3519_v0  ;;  %v316_v24 = vpop.permute.xlu0 %315 }
  0xc2   :  { %v234_v25 = vsel %vm233_vm1, %v230_v21, %v232_v11  ;;  %v235_v26 = vsel %vm233_vm1, %v228_v52, %v230_v21  ;;  %v293_v29 = vrot.slane %v254_v15, %v3499_v53  ;;  %v297_v30 = vrot.slane %v255_v14, %v3499_v53 }
  0xc3   :  { %v256_v27 = vmul.f32 %v249_v16, %v235_v26  ;;  %v257_v28 = vmul.f32 %v253_v17, %v234_v25  ;;  %v334_v31 = vmul.f32 %v321_v22, %v316_v24  ;;  %v335_v32 = vmul.f32 %v325_v23, %v316_v24 }
  0xc4   :  { %v278_v33 = vmul.f32 %v265_v20, %v260_v51  ;;  %v279_v34 = vmul.f32 %v269_v19, %v260_v51  ;;  %v349_v58 = vrot.slane %v254_v15, %v3524_v8  ;;  %v353_v50 = vrot.slane %v255_v14, %v3524_v8 }
  0xc5   :  { %v273_v35 = vrot.slane %v256_v27, %v3477_v42  ;;  %v277_v36 = vrot.slane %v257_v28, %v3477_v42  ;;  %v329_v37 = vrot.slane %v256_v27, %v3519_v0  ;;  %v333_v40 = vrot.slane %v257_v28, %v3519_v0  ;;  %1207 = vrot.lane.b32.xlu1 %v3383_v2, %s3296_s20  ;;  %v288_v41 = vpop.permute.xlu1 %287  ;;  %v371_v19 = vpop.permute.xlu0 %370 }
  0xc6   :  { %v282_v43 = vadd.f32 %v278_v33, %v221_v5  ;;  %v283_v46 = vadd.f32 %v279_v34, %v222_v63  ;;  %v301_v47 = vrot.slane %v256_v27, %v3499_v53  ;;  %v305_v48 = vrot.slane %v257_v28, %v3499_v53  ;;  %3155 = vset.pattern.permute.xlu1 %v3304_v49 }
  0xc7   :  { %v280_v52 = vmul.f32 %v273_v35, %v260_v51  ;;  %v281_v54 = vmul.f32 %v277_v36, %v260_v51  ;;  %v306_v57 = vmul.f32 %v293_v29, %v288_v41  ;;  %v307_v59 = vmul.f32 %v297_v30, %v288_v41 }
  0xc8   :  { %v308_v60 = vmul.f32 %v301_v47, %v288_v41  ;;  %v309_v61 = vmul.f32 %v305_v48, %v288_v41  ;;  %v336_v62 = vmul.f32 %v329_v37, %v316_v24  ;;  %v337_v10 = vmul.f32 %v333_v40, %v316_v24 }
  0xc9   :  { %v284_v5 = vadd.f32 %v280_v52, %v223_v1  ;;  %v285_v63 = vadd.f32 %v281_v54, %v224_v9  ;;  %1209 = vrot.lane.b32.xlu1 %v3400_v6, %s3296_s20  ;;  %v310_v11 = vadd.f32 %v306_v57, %v282_v43  ;;  %v311_v12 = vadd.f32 %v307_v59, %v283_v46 }
  0xca   :  { %v344_v13 = vpop.permute.xlu1 %343  ;;  %v357_v51 = vrot.slane %v256_v27, %v3524_v8  ;;  %v361_v15 = vrot.slane %v257_v28, %v3524_v8  ;;  %v390_v28 = vrot.slane %v3479_v44, %v3519_v0  ;;  %v394_v30 = vrot.slane %v3481_v45, %v3519_v0 }
  0xcb   :  { %v312_v16 = vadd.f32 %v308_v60, %v284_v5  ;;  %v313_v14 = vadd.f32 %v309_v61, %v285_v63  ;;  %v362_v17 = vmul.f32 %v349_v58, %v344_v13  ;;  %v363_v18 = vmul.f32 %v353_v50, %v344_v13 }
  0xcc   :  { %v338_v20 = vadd.f32 %v334_v31, %v310_v11  ;;  %v339_v21 = vadd.f32 %v335_v32, %v311_v12  ;;  %v364_v22 = vmul.f32 %v357_v51, %v344_v13  ;;  %v365_v1 = vmul.f32 %v361_v15, %v344_v13  ;;  %v375_v31 = vpop.permute.xlu0 %374 }
  0xcd   :  { %v340_v9 = vadd.f32 %v336_v62, %v312_v16  ;;  %v341_v23 = vadd.f32 %v337_v10, %v313_v14  ;;  %1213 = vrot.lane.b32.xlu1 %v3405_v7, %s3296_s20  ;;  %v3305_v37 = vmov 35   ;;  %v386_v40 = vrot.slane %v3502_v55, %v3519_v0 }
  0xce   :  { %v366_v24 = vadd.f32 %v362_v17, %v338_v20  ;;  %v367_v25 = vadd.f32 %v363_v18, %v339_v21  ;;  %v398_v41 = vrot.slane %v3504_v56, %v3519_v0 }
  0xcf   :  { %v368_v26 = vadd.f32 %v364_v22, %v340_v9  ;;  %v369_v27 = vadd.f32 %v365_v1, %v341_v23  ;;  %v405_v29 = vpop.permute.xlu1 %404 }
  0xd0   :  { %v3612_v49 = vpop.permute.xlu0 %432 }
  0xd1   :  { %1297 = vperm.xlu1 %3155, %v3388_v3  }
  0xd3   :  { %v373_v32 = vpop.permute.xlu1 %372 }
  0xd4   :  { %v381_v33 = vsel %vm378_vm2, %v371_v19, %v373_v32  ;;  %v380_v34 = vsel %vm378_vm2, %v373_v32, %v375_v31 }
  0xd5   :  { %v3601_v35 = vmul.f32 %v390_v28, %v381_v33  ;;  %v401_v36 = vmul.f32 %v394_v30, %v380_v34  ;;  %3156 = vset.pattern.permute.xlu1 %v3305_v37  ;;  %v543_v37 = vrot.slane %v3504_v56, %v3524_v8 }
  0xd6   :  { %1325 = vperm.xlu1 %3156, %v3388_v3  }
  0xd7   :  { %v414_v43 = vrot.slane %v3601_v35, %v3477_v42  ;;  %v418_v46 = vrot.slane %v401_v36, %v3477_v42  ;;  %v377_v47 = vpop.permute.xlu1 %376  ;;  %v446_v48 = vrot.slane %v401_v36, %v3499_v53  ;;  %v474_v11 = vrot.slane %v401_v36, %v3519_v0 }
  0xd8   :  { %v379_v52 = vsel %vm378_vm2, %v375_v31, %v377_v47  ;;  %v382_v54 = vsel %vm378_vm2, %v377_v47, %v371_v19  ;;  %v502_v20 = vrot.slane %v401_v36, %v3524_v8  ;;  %v550_v31 = vpop.permute.xlu0 %549  ;;  %v531_v36 = vrot.slane %v3502_v55, %v3524_v8 }
  0xd9   :  { %v3618_v58 = vmul.f32 %v386_v40, %v382_v54  ;;  %v402_v50 = vmul.f32 %v398_v41, %v379_v52  ;;  %v424_v3 = vmul.f32 %v414_v43, %v405_v29  ;;  %v425_v57 = vmul.f32 %v418_v46, %v405_v29 }
  0xda   :  { %v453_v59 = vmul.f32 %v446_v48, %v3612_v49  ;;  %v539_v40 = vrot.slane %v3481_v45, %v3524_v8  ;;  %v535_v52 = vrot.slane %v3479_v44, %v3524_v8 }
  0xdb   :  { %v410_v60 = vrot.slane %v3618_v58, %v3477_v42  ;;  %v422_v61 = vrot.slane %v402_v50, %v3477_v42  ;;  %v428_v62 = vadd.f32 %v424_v3, %v367_v25  ;;  %v429_v10 = vadd.f32 %v425_v57, %v368_v26  ;;  %v461_v5 = vpop.permute.xlu1 %460 }
  0xdc   :  { %v450_v63 = vrot.slane %v402_v50, %v3499_v53  ;;  %v478_v15 = vrot.slane %v402_v50, %v3519_v0  ;;  %v481_v18 = vmul.f32 %v474_v11, %v461_v5  ;;  %v506_v9 = vrot.slane %v402_v50, %v3524_v8  ;;  %v520_v33 = vpop.permute.xlu0 %519 }
  0xdd   :  { %v423_v12 = vmul.f32 %v410_v60, %v405_v29  ;;  %v426_v13 = vmul.f32 %v422_v61, %v405_v29  ;;  %v457_v51 = vadd.f32 %v453_v59, %v429_v10  ;;  %v438_v34 = vrot.slane %v3618_v58, %v3499_v53 }
  0xde   :  { %v454_v17 = vmul.f32 %v450_v63, %v3612_v49  ;;  %v482_v22 = vmul.f32 %v478_v15, %v461_v5  ;;  %v466_v48 = vrot.slane %v3618_v58, %v3519_v0  ;;  %v442_v59 = vrot.slane %v3601_v35, %v3499_v53 }
  0xdf   :  { %v427_v16 = vadd.f32 %v423_v12, %v366_v24  ;;  %v430_v14 = vadd.f32 %v426_v13, %v369_v27  ;;  %v485_v1 = vadd.f32 %v481_v18, %v457_v51  ;;  %v451_v54 = vmul.f32 %v438_v34, %v3612_v49 }
  0xe0   :  { %v489_v19 = vpop.permute.xlu1 %488  ;;  %v578_v11 = vpop.permute.xlu0 %577  ;;  %v479_v12 = vmul.f32 %v466_v48, %v461_v5  ;;  %v452_v15 = vmul.f32 %v442_v59, %v3612_v49  ;;  %v494_v18 = vrot.slane %v3618_v58, %v3524_v8 }
  0xe1   :  { %v458_v21 = vadd.f32 %v454_v17, %v430_v14  ;;  %v509_v23 = vmul.f32 %v502_v20, %v489_v19  ;;  %v510_v26 = vmul.f32 %v506_v9, %v489_v19  ;;  %v455_v61 = vadd.f32 %v451_v54, %v427_v16 }
  0xe2   :  { %v470_v14 = vrot.slane %v3601_v35, %v3519_v0  ;;  %v456_v20 = vadd.f32 %v452_v15, %v428_v62  ;;  %v695_v54 = vrot.slane %v3383_v2, %v3499_v53 }
  0xe3   :  { %v486_v25 = vadd.f32 %v482_v22, %v458_v21  ;;  %v3630_v29 = vadd.f32 %v509_v23, %v485_v1  ;;  %v483_v17 = vadd.f32 %v479_v12, %v455_v61  ;;  %v498_v22 = vrot.slane %v3601_v35, %v3524_v8 }
  0xe4   :  { %v516_v28 = vpop.permute.xlu1 %515  ;;  %v480_v21 = vmul.f32 %v470_v14, %v461_v5  ;;  %v3677_v9 = vpop.permute.xlu0 %661  ;;  %v507_v23 = vmul.f32 %v494_v18, %v489_v19  ;;  %v667_v35 = vrot.slane %v3383_v2, %v3477_v42 }
  0xe5   :  { %v514_v30 = vadd.f32 %v510_v26, %v486_v25 }
  0xe6   :  { %v484_v5 = vadd.f32 %v480_v21, %v456_v20 }
  0xe8   :  { %v518_v24 = vpop.permute.xlu1 %517 }
  0xe9   :  { %v525_v47 = vsel %vm523_vm3, %v518_v24, %v520_v33  ;;  %v526_v50 = vsel %vm523_vm3, %v516_v28, %v518_v24 }
  0xea   :  { %v3656_v60 = vmul.f32 %v539_v40, %v525_v47  ;;  %v3660_v63 = vmul.f32 %v535_v52, %v526_v50 }
  0xec   :  { %v522_v27 = vpop.permute.xlu1 %521  ;;  %v563_v16 = vrot.slane %v3656_v60, %v3477_v42  ;;  %v559_v1 = vrot.slane %v3660_v63, %v3477_v42  ;;  %v591_v34 = vrot.slane %v3656_v60, %v3499_v53  ;;  %v587_v52 = vrot.slane %v3660_v63, %v3499_v53 }
  0xed   :  { %v524_v41 = vsel %vm523_vm3, %v520_v33, %v522_v27  ;;  %v527_v43 = vsel %vm523_vm3, %v522_v27, %v516_v28  ;;  %v508_v28 = vmul.f32 %v498_v22, %v489_v19  ;;  %v511_v27 = vadd.f32 %v507_v23, %v483_v17  ;;  %v3691_v19 = vpop.permute.xlu0 %745 }
  0xee   :  { %v3650_v3 = vmul.f32 %v531_v36, %v527_v43  ;;  %v3652_v57 = vmul.f32 %v543_v37, %v524_v41  ;;  %v570_v24 = vmul.f32 %v563_v16, %v550_v31  ;;  %v569_v33 = vmul.f32 %v559_v1, %v550_v31 }
  0xef   :  { %v671_v36 = vrot.slane %v3400_v6, %v3477_v42  ;;  %v675_v41 = vrot.slane %v3395_v4, %v3477_v42  ;;  %v679_v43 = vrot.slane %v3405_v7, %v3477_v42  ;;  %v512_v48 = vadd.f32 %v508_v28, %v484_v5 }
  0xf0   :  { %v3632_v32 = vpop.permute.xlu1 %605  ;;  %v555_v13 = vrot.slane %v3650_v3, %v3477_v42  ;;  %v567_v51 = vrot.slane %v3652_v57, %v3477_v42  ;;  %v583_v58 = vrot.slane %v3650_v3, %v3499_v53  ;;  %v595_v62 = vrot.slane %v3652_v57, %v3499_v53 }
  0xf1   :  { %v623_v61 = vrot.slane %v3652_v57, %v3519_v0  ;;  %v573_v12 = vadd.f32 %v569_v33, %v512_v48  ;;  %v615_v16 = vrot.slane %v3660_v63, %v3519_v0  ;;  %v703_v17 = vrot.slane %v3395_v4, %v3499_v53  ;;  %v775_v23 = vpop.permute.xlu0 %774 }
  0xf2   :  { %v568_v25 = vmul.f32 %v555_v13, %v550_v31  ;;  %v571_v26 = vmul.f32 %v567_v51, %v550_v31  ;;  %v574_v31 = vadd.f32 %v570_v24, %v3630_v29  ;;  %v596_v50 = vmul.f32 %v583_v58, %v578_v11 }
  0xf3   :  { %v599_v59 = vmul.f32 %v595_v62, %v578_v11  ;;  %v598_v13 = vmul.f32 %v591_v34, %v578_v11  ;;  %v619_v51 = vrot.slane %v3656_v60, %v3519_v0  ;;  %v699_v29 = vrot.slane %v3400_v6, %v3499_v53 }
  0xf4   :  { %v572_v37 = vadd.f32 %v568_v25, %v511_v27  ;;  %v575_v40 = vadd.f32 %v571_v26, %v514_v30  ;;  %v611_v30 = vrot.slane %v3650_v3, %v3519_v0  ;;  %v597_v20 = vmul.f32 %v587_v52, %v578_v11 }
  0xf5   :  { %v3643_v46 = vpop.permute.xlu1 %633  ;;  %v602_v21 = vadd.f32 %v598_v13, %v574_v31  ;;  %v626_v22 = vmul.f32 %v619_v51, %v3632_v32  ;;  %v647_v1 = vrot.slane %v3656_v60, %v3524_v8  ;;  %v627_v26 = vmul.f32 %v623_v61, %v3632_v32  ;;  %v779_v61 = vpop.permute.xlu0 %778 }
  0xf6   :  { %v600_v15 = vadd.f32 %v596_v50, %v572_v37  ;;  %v603_v14 = vadd.f32 %v599_v59, %v575_v40  ;;  %v624_v25 = vmul.f32 %v611_v30, %v3632_v32  ;;  %v707_v28 = vrot.slane %v3405_v7, %v3499_v53 }
  0xf7   :  { %v723_v24 = vrot.slane %v3383_v2, %v3519_v0  ;;  %v601_v27 = vadd.f32 %v597_v20, %v573_v12  ;;  %v625_v11 = vmul.f32 %v615_v16, %v3632_v32  ;;  %v643_v58 = vrot.slane %v3660_v63, %v3524_v8 }
  0xf8   :  { %v654_v62 = vmul.f32 %v647_v1, %v3643_v46  ;;  %v628_v60 = vadd.f32 %v624_v25, %v600_v15  ;;  %v631_v5 = vadd.f32 %v627_v26, %v603_v14  ;;  %v639_v33 = vrot.slane %v3650_v3, %v3524_v8 }
  0xf9   :  { %v651_v34 = vrot.slane %v3652_v57, %v3524_v8  ;;  %v630_v40 = vadd.f32 %v626_v22, %v602_v21  ;;  %v727_v48 = vrot.slane %v3400_v6, %v3519_v0  ;;  %v731_v32 = vrot.slane %v3395_v4, %v3519_v0 }
  0xfa   :  { %v3658_v10 = vpop.permute.xlu1 %689  ;;  %v787_v63 = vsub.s32 5, %v3471_v39  ;;  %v652_v31 = vmul.f32 %v639_v33, %v3643_v46  ;;  %v653_v52 = vmul.f32 %v643_v58, %v3643_v46  ;;  %v735_v3 = vrot.slane %v3405_v7, %v3519_v0 }
  0xfb   :  { %v655_v50 = vmul.f32 %v651_v34, %v3643_v46  ;;  %v658_v57 = vadd.f32 %v654_v62, %v630_v40  ;;  %v680_v59 = vmul.f32 %v667_v35, %v3677_v9  ;;  %v682_v30 = vmul.f32 %v675_v41, %v3677_v9 }
  0xfc   :  { %v629_v12 = vadd.f32 %v625_v11, %v601_v27  ;;  %v656_v13 = vadd.f32 %v652_v31, %v628_v60  ;;  %v683_v15 = vmul.f32 %v679_v43, %v3677_v9  ;;  %v751_v46 = vrot.slane %v3383_v2, %v3524_v8 }
  0xfd   :  { %v659_v51 = vadd.f32 %v655_v50, %v631_v5  ;;  %v788_v16 = vrot.slane %v3502_v55, %v787_v63  ;;  %v800_v20 = vrot.slane %v3504_v56, %v787_v63  ;;  %v796_v35 = vrot.slane %v3481_v45, %v787_v63 }
  0xfe   :  { %v657_v41 = vadd.f32 %v653_v52, %v629_v12  ;;  %v681_v21 = vmul.f32 %v671_v36, %v3677_v9  ;;  %v686_v1 = vadd.f32 %v682_v30, %v658_v57  ;;  %v755_v25 = vrot.slane %v3400_v6, %v3524_v8 }
  0xff   :  { %v3679_v49 = vpop.permute.xlu1 %717  ;;  %v792_v27 = vrot.slane %v3479_v44, %v787_v63  ;;  %v684_v11 = vadd.f32 %v680_v59, %v656_v13  ;;  %v687_v58 = vadd.f32 %v683_v15, %v659_v51  ;;  %v708_v9 = vmul.f32 %v695_v54, %v3658_v10 }
 0x100   :  { %v710_v36 = vmul.f32 %v703_v17, %v3658_v10  ;;  %v711_v62 = vmul.f32 %v707_v28, %v3658_v10  ;;  %v685_v34 = vadd.f32 %v681_v21, %v657_v41  ;;  %v709_v2 = vmul.f32 %v699_v29, %v3658_v10  ;;  %v3789_v28 = vpop.permute.xlu0 %862 }
 0x101   :  { %v759_v54 = vrot.slane %v3395_v4, %v3524_v8  ;;  %v736_v40 = vmul.f32 %v723_v24, %v3679_v49  ;;  %v763_v63 = vrot.slane %v3405_v7, %v3524_v8  ;;  %v737_v6 = vmul.f32 %v727_v48, %v3679_v49 }
 0x102   :  { %v714_v31 = vadd.f32 %v710_v36, %v686_v1  ;;  %v932_v4 = vsub.s32 6, %v3471_v39  ;;  %v712_v29 = vadd.f32 %v708_v9, %v684_v11  ;;  %v715_v52 = vadd.f32 %v711_v62, %v687_v58 }
 0x103   :  { %v766_v7 = vmul.f32 %v759_v54, %v3691_v19  ;;  %v767_v12 = vmul.f32 %v763_v63, %v3691_v19  ;;  %v765_v51 = vmul.f32 %v755_v25, %v3691_v19 }
 0x104   :  { %v3697_v47 = vpop.permute.xlu1 %806  ;;  %v918_v57 = vpop.permute.xlu0 %917  ;;  %v740_v59 = vadd.f32 %v736_v40, %v712_v29 }
 0x108   :  { %v773_v18 = vpop.permute.xlu1 %772  ;;  %v922_v62 = vpop.permute.xlu0 %921 }
 0x109   :  { %v784_v43 = vsel %vm780_vm4, %v779_v61, %v773_v18  ;;  %v783_v26 = vsel %vm780_vm4, %v773_v18, %v775_v23 }
 0x10a   :  { %v3773_v60 = vmul.f32 %v800_v20, %v784_v43  ;;  %v3787_v17 = vmul.f32 %v788_v16, %v783_v26  ;;  %v933_v20 = vrot.slane %v3502_v55, %v932_v4 }
 0x10c   :  { %v777_v37 = vpop.permute.xlu1 %776  ;;  %v824_v50 = vrot.slane %v3773_v60, %v3477_v42  ;;  %v868_v58 = vrot.slane %v3787_v17, %v3519_v0  ;;  %v880_v9 = vrot.slane %v3773_v60, %v3519_v0 }
 0x10d   :  { %v781_v22 = vsel %vm780_vm4, %v777_v37, %v779_v61  ;;  %v782_v5 = vsel %vm780_vm4, %v775_v23, %v777_v37  ;;  %v738_v23 = vmul.f32 %v731_v32, %v3679_v49  ;;  %v739_v37 = vmul.f32 %v735_v3, %v3679_v49 }
 0x10e   :  { %v3777_v33 = vmul.f32 %v796_v35, %v781_v22  ;;  %v3797_v10 = vmul.f32 %v792_v27, %v782_v5  ;;  %v713_v32 = vadd.f32 %v709_v2, %v685_v34  ;;  %v764_v3 = vmul.f32 %v751_v46, %v3691_v19 }
 0x10f   :  { %v812_v49 = vrot.slane %v3787_v17, %v3477_v42  ;;  %v742_v30 = vadd.f32 %v738_v23, %v714_v31  ;;  %v743_v61 = vadd.f32 %v739_v37, %v715_v52  ;;  %v828_v16 = vmul.f32 %v824_v50, %v3697_v47 }
 0x110   :  { %v3747_v14 = vpop.permute.xlu1 %834  ;;  %v820_v24 = vrot.slane %v3777_v33, %v3477_v42  ;;  %v741_v13 = vadd.f32 %v737_v6, %v713_v32  ;;  %v816_v15 = vrot.slane %v3797_v10, %v3477_v42  ;;  %v937_v35 = vrot.slane %v3479_v44, %v932_v4 }
 0x111   :  { %v825_v41 = vmul.f32 %v812_v49, %v3697_v47  ;;  %v848_v21 = vrot.slane %v3777_v33, %v3499_v53  ;;  %v941_v19 = vrot.slane %v3481_v45, %v932_v4  ;;  %v945_v22 = vrot.slane %v3504_v56, %v932_v4 }
 0x112   :  { %v827_v46 = vmul.f32 %v820_v24, %v3697_v47  ;;  %v768_v1 = vadd.f32 %v764_v3, %v740_v59  ;;  %v770_v25 = vadd.f32 %v766_v7, %v742_v30  ;;  %v771_v26 = vadd.f32 %v767_v12, %v743_v61 }
 0x113   :  { %v852_v27 = vrot.slane %v3773_v60, %v3499_v53  ;;  %v769_v11 = vadd.f32 %v765_v51, %v741_v13  ;;  %v826_v36 = vmul.f32 %v816_v15, %v3697_v47  ;;  %v840_v2 = vrot.slane %v3787_v17, %v3499_v53 }
 0x114   :  { %v831_v5 = vadd.f32 %v827_v46, %v770_v25  ;;  %v832_v34 = vadd.f32 %v828_v16, %v771_v26  ;;  %v876_v40 = vrot.slane %v3777_v33, %v3519_v0  ;;  %v829_v23 = vadd.f32 %v825_v41, %v768_v1 }
 0x115   :  { %v3779_v18 = vpop.permute.xlu1 %890  ;;  %v856_v54 = vmul.f32 %v852_v27, %v3747_v14  ;;  %v844_v37 = vrot.slane %v3797_v10, %v3499_v53  ;;  %v855_v63 = vmul.f32 %v848_v21, %v3747_v14  ;;  %v830_v52 = vadd.f32 %v826_v36, %v769_v11 }
 0x116   :  { %v853_v50 = vmul.f32 %v840_v2, %v3747_v14  ;;  %v884_v3 = vmul.f32 %v880_v9, %v3789_v28  ;;  %v3854_v59 = vsub.s32 7, %v3471_v39  ;;  %v872_v30 = vrot.slane %v3797_v10, %v3519_v0 }
 0x117   :  { %v859_v7 = vadd.f32 %v855_v63, %v831_v5  ;;  %v860_v49 = vadd.f32 %v856_v54, %v832_v34  ;;  %v854_v61 = vmul.f32 %v844_v37, %v3747_v14  ;;  %v883_v51 = vmul.f32 %v876_v40, %v3789_v28 }
 0x118   :  { %v908_v15 = vrot.slane %v3773_v60, %v3524_v8  ;;  %v881_v16 = vmul.f32 %v868_v58, %v3789_v28  ;;  %v857_v14 = vadd.f32 %v853_v50, %v829_v23  ;;  %v904_v21 = vrot.slane %v3777_v33, %v3524_v8 }
 0x119   :  { %v887_v41 = vadd.f32 %v883_v51, %v859_v7  ;;  %v882_v60 = vmul.f32 %v872_v30, %v3789_v28  ;;  %v1078_v28 = vrot.slane %v3502_v55, %v3854_v59 }
 0x11a   :  { %v3808_v48 = vpop.permute.xlu1 %951  ;;  %v911_v26 = vmul.f32 %v904_v21, %v3779_v18  ;;  %v885_v58 = vadd.f32 %v881_v16, %v857_v14 }
 0x11e   :  { %v920_v43 = vpop.permute.xlu1 %919 }
 0x11f   :  { %v928_v47 = vsel %vm925_vm5, %v918_v57, %v920_v43  ;;  %v927_v6 = vsel %vm925_vm5, %v920_v43, %v922_v62  ;;  %v912_v43 = vmul.f32 %v908_v15, %v3779_v18 }
 0x120   :  { %v3861_v12 = vmul.f32 %v937_v35, %v927_v6  ;;  %v888_v35 = vadd.f32 %v884_v3, %v860_v49 }
 0x122   :  { %v924_v31 = vpop.permute.xlu1 %923  ;;  %v961_v25 = vrot.slane %v3861_v12, %v3477_v42  ;;  %v916_v5 = vadd.f32 %v912_v43, %v888_v35  ;;  %v1045_v16 = vrot.slane %v3861_v12, %v3524_v8 }
 0x123   :  { %v926_v4 = vsel %vm925_vm5, %v922_v62, %v924_v31  ;;  %v929_v29 = vsel %vm925_vm5, %v924_v31, %v918_v57  ;;  %v3859_v57 = vmul.f32 %v933_v20, %v928_v47  ;;  %v858_v20 = vadd.f32 %v854_v61, %v830_v52 }
 0x124   :  { %v3848_v24 = vmul.f32 %v941_v19, %v926_v4  ;;  %v3850_v32 = vmul.f32 %v945_v22, %v929_v29  ;;  %v980_v19 = vpop.permute.xlu0 %979  ;;  %v896_v22 = vrot.slane %v3787_v17, %v3524_v8  ;;  %v900_v17 = vrot.slane %v3797_v10, %v3524_v8 }
 0x125   :  { %v957_v1 = vrot.slane %v3859_v57, %v3477_v42  ;;  %v886_v9 = vadd.f32 %v882_v60, %v858_v20  ;;  %v915_v62 = vadd.f32 %v911_v26, %v887_v41  ;;  %v971_v23 = vmul.f32 %v961_v25, %v3808_v48 }
 0x126   :  { %v3863_v13 = vpop.permute.xlu1 %1007  ;;  %v965_v39 = vrot.slane %v3848_v24, %v3477_v42  ;;  %v969_v46 = vrot.slane %v3850_v32, %v3477_v42  ;;  %v909_v36 = vmul.f32 %v896_v22, %v3779_v18  ;;  %v993_v34 = vrot.slane %v3848_v24, %v3499_v53 }
 0x127   :  { %v997_v2 = vrot.slane %v3850_v32, %v3499_v53  ;;  %v910_v40 = vmul.f32 %v900_v17, %v3779_v18  ;;  %v970_v55 = vmul.f32 %v957_v1, %v3808_v48  ;;  %v1082_v10 = vrot.slane %v3479_v44, %v3854_v59 }
 0x128   :  { %v972_v33 = vmul.f32 %v965_v39, %v3808_v48  ;;  %v973_v27 = vmul.f32 %v969_v46, %v3808_v48  ;;  %v3898_v54 = vpop.permute.xlu0 %1096  ;;  %v985_v31 = vrot.slane %v3859_v57, %v3499_v53  ;;  %v989_v47 = vrot.slane %v3861_v12, %v3499_v53 }
 0x129   :  { %v913_v4 = vadd.f32 %v909_v36, %v885_v58  ;;  %v914_v29 = vadd.f32 %v910_v40, %v886_v9  ;;  %v1086_v18 = vrot.slane %v3481_v45, %v3854_v59  ;;  %v1090_v48 = vrot.slane %v3504_v56, %v3854_v59 }
 0x12a   :  { %v976_v37 = vadd.f32 %v972_v33, %v915_v62  ;;  %v977_v63 = vadd.f32 %v973_v27, %v916_v5  ;;  %v1000_v52 = vmul.f32 %v993_v34, %v980_v19  ;;  %v1001_v50 = vmul.f32 %v997_v2, %v980_v19 }
 0x12b   :  { %v3887_v11 = vpop.permute.xlu1 %1035  ;;  %v1021_v44 = vrot.slane %v3848_v24, %v3519_v0  ;;  %v1025_v3 = vrot.slane %v3850_v32, %v3519_v0  ;;  %v974_v7 = vadd.f32 %v970_v55, %v913_v4  ;;  %v975_v49 = vadd.f32 %v971_v23, %v914_v29 }
 0x12c   :  { %v1013_v30 = vrot.slane %v3859_v57, %v3519_v0  ;;  %v1017_v61 = vrot.slane %v3861_v12, %v3519_v0  ;;  %v998_v45 = vmul.f32 %v985_v31, %v980_v19  ;;  %v999_v51 = vmul.f32 %v989_v47, %v980_v19  ;;  %v1067_v59 = vpop.permute.xlu0 %1066 }
 0x12d   :  { %v1004_v15 = vadd.f32 %v1000_v52, %v976_v37  ;;  %v1005_v56 = vadd.f32 %v1001_v50, %v977_v63  ;;  %v1041_v46 = vrot.slane %v3859_v57, %v3524_v8  ;;  %v1028_v41 = vmul.f32 %v1021_v44, %v3863_v13 }
 0x12e   :  { %v1029_v35 = vmul.f32 %v1025_v3, %v3863_v13  ;;  %v1002_v19 = vadd.f32 %v998_v45, %v974_v7  ;;  %v1003_v60 = vadd.f32 %v999_v51, %v975_v49  ;;  %v1026_v57 = vmul.f32 %v1013_v30, %v3863_v13 }
 0x12f   :  { %v1063_v6 = vpop.permute.xlu1 %1062  ;;  %v1027_v12 = vmul.f32 %v1017_v61, %v3863_v13  ;;  %v1032_v22 = vadd.f32 %v1028_v41, %v1004_v15  ;;  %v1049_v25 = vrot.slane %v3848_v24, %v3524_v8  ;;  %v1053_v26 = vrot.slane %v3850_v32, %v3524_v8 }
 0x130   :  { %v1033_v1 = vadd.f32 %v1029_v35, %v1005_v56  ;;  %v1054_v24 = vmul.f32 %v1041_v46, %v3887_v11  ;;  %v1055_v32 = vmul.f32 %v1045_v16, %v3887_v11  ;;  %v1030_v5 = vadd.f32 %v1026_v57, %v1002_v19  ;;  %v1125_v31 = vpop.permute.xlu0 %1124 }
 0x131   :  { %v1056_v36 = vmul.f32 %v1049_v25, %v3887_v11  ;;  %v1057_v62 = vmul.f32 %v1053_v26, %v3887_v11  ;;  %v1031_v34 = vadd.f32 %v1027_v12, %v1003_v60 }
 0x132   :  { %v1058_v29 = vadd.f32 %v1054_v24, %v1030_v5 }
 0x133   :  { %v1065_v39 = vpop.permute.xlu1 %1064  ;;  %v1060_v23 = vadd.f32 %v1056_v36, %v1032_v22 }
 0x134   :  { %v1072_v14 = vsel %vm1070_vm6, %v1065_v39, %v1067_v59  ;;  %v1073_v20 = vsel %vm1070_vm6, %v1063_v6, %v1065_v39  ;;  %v3981_v39 = vpop.permute.xlu0 %1241 }
 0x135   :  { %v3931_v21 = vmul.f32 %v1078_v28, %v1073_v20  ;;  %v3933_v43 = vmul.f32 %v1082_v10, %v1072_v14  ;;  %v1061_v10 = vadd.f32 %v1057_v62, %v1033_v1 }
 0x137   :  { %v1069_v33 = vpop.permute.xlu1 %1068  ;;  %v1102_v27 = vrot.slane %v3931_v21, %v3477_v42  ;;  %v1106_v28 = vrot.slane %v3933_v43, %v3477_v42  ;;  %v1134_v52 = vrot.slane %v3933_v43, %v3499_v53  ;;  %v1158_v56 = vrot.slane %v3931_v21, %v3519_v0 }
 0x138   :  { %v1071_v58 = vsel %vm1070_vm6, %v1067_v59, %v1069_v33  ;;  %v1074_v13 = vsel %vm1070_vm6, %v1069_v33, %v1063_v6  ;;  %v1162_v59 = vrot.slane %v3933_v43, %v3519_v0  ;;  %v1186_v12 = vrot.slane %v3931_v21, %v3524_v8 }
 0x139   :  { %v3949_v9 = vmul.f32 %v1086_v18, %v1071_v58  ;;  %v3951_v17 = vmul.f32 %v1090_v48, %v1074_v13  ;;  %v1115_v37 = vmul.f32 %v1102_v27, %v3898_v54  ;;  %v1116_v63 = vmul.f32 %v1106_v28, %v3898_v54  ;;  %v2437_v58 = vld [vmem:[#allocation2 + $0x20] ss:$0 sm:$0xff]  ;;  %v2438_v13 = vld [vmem:[#allocation2 + $0x28] ss:$0 sm:$0xff] }
 0x13a   :  { %v1059_v18 = vadd.f32 %v1055_v32, %v1031_v34  ;;  %v1130_v48 = vrot.slane %v3931_v21, %v3499_v53  ;;  %v1144_v15 = vmul.f32 %v1134_v52, %v1125_v31  ;;  %v1190_v22 = vrot.slane %v3933_v43, %v3524_v8  ;;  %v1212_v21 = vpop.permute.xlu0 %1211 }
 0x13b   :  { %v1110_v2 = vrot.slane %v3949_v9, %v3477_v42  ;;  %v1114_v40 = vrot.slane %v3951_v17, %v3477_v42  ;;  %v1153_v55 = vpop.permute.xlu1 %1152  ;;  %v1138_v6 = vrot.slane %v3949_v9, %v3499_v53  ;;  %v1142_v4 = vrot.slane %v3951_v17, %v3499_v53 }
 0x13c   :  { %v1119_v3 = vadd.f32 %v1115_v37, %v1058_v29  ;;  %v1120_v7 = vadd.f32 %v1116_v63, %v1059_v18  ;;  %v1170_v61 = vrot.slane %v3951_v17, %v3519_v0  ;;  %v1166_v45 = vrot.slane %v3949_v9, %v3519_v0  ;;  %v2440_v37 = vld [vmem:[#allocation2 + $0x38] ss:$0 sm:$0xff] }
 0x13d   :  { %v1117_v47 = vmul.f32 %v1110_v2, %v3898_v54  ;;  %v1118_v11 = vmul.f32 %v1114_v40, %v3898_v54  ;;  %v1145_v54 = vmul.f32 %v1138_v6, %v1125_v31  ;;  %v1146_v30 = vmul.f32 %v1142_v4, %v1125_v31 }
 0x13e   :  { %v1143_v51 = vmul.f32 %v1130_v48, %v1125_v31  ;;  %v1148_v20 = vadd.f32 %v1144_v15, %v1120_v7  ;;  %v1171_v41 = vmul.f32 %v1158_v56, %v1153_v55  ;;  %v1172_v35 = vmul.f32 %v1162_v59, %v1153_v55  ;;  %v1270_v4 = vpop.permute.xlu0 %1269 }
 0x13f   :  { %v1121_v50 = vadd.f32 %v1117_v47, %v1060_v23  ;;  %v1122_v44 = vadd.f32 %v1118_v11, %v1061_v10  ;;  %v1173_v60 = vmul.f32 %v1166_v45, %v1153_v55  ;;  %v1174_v57 = vmul.f32 %v1170_v61, %v1153_v55  ;;  %v2439_v10 = vld [vmem:[#allocation2 + $0x30] ss:$0 sm:$0xff] }
 0x140   :  { %v1181_v49 = vpop.permute.xlu1 %1180  ;;  %v1147_v14 = vadd.f32 %v1143_v51, %v1119_v3  ;;  %v1198_v1 = vrot.slane %v3951_v17, %v3524_v8  ;;  %v1194_v25 = vrot.slane %v3949_v9, %v3524_v8  ;;  %v1176_v32 = vadd.f32 %v1172_v35, %v1148_v20 }
 0x141   :  { %v1149_v46 = vadd.f32 %v1145_v54, %v1121_v50  ;;  %v1150_v16 = vadd.f32 %v1146_v30, %v1122_v44  ;;  %v1199_v27 = vmul.f32 %v1186_v12, %v1181_v49  ;;  %v1200_v28 = vmul.f32 %v1190_v22, %v1181_v49 }
 0x142   :  { %v1175_v24 = vadd.f32 %v1171_v41, %v1147_v14  ;;  %v1201_v62 = vmul.f32 %v1194_v25, %v1181_v49  ;;  %v1202_v43 = vmul.f32 %v1198_v1, %v1181_v49 }
 0x143   :  { %v1177_v26 = vadd.f32 %v1173_v60, %v1149_v46  ;;  %v1178_v33 = vadd.f32 %v1174_v57, %v1150_v16  ;;  %v1204_v40 = vadd.f32 %v1200_v28, %v1176_v32 }
 0x144   :  { %v1208_v19 = vpop.permute.xlu1 %1207  ;;  %v1203_v2 = vadd.f32 %v1199_v27, %v1175_v24 }
 0x145   :  { %v1205_v55 = vadd.f32 %v1201_v62, %v1177_v26  ;;  %v1206_v23 = vadd.f32 %v1202_v43, %v1178_v33  ;;  %v1355_v62 = vpop.permute.xlu0 %1354 }
 0x148   :  { %v1210_v36 = vpop.permute.xlu1 %1209 }
 0x149   :  { %v1217_v17 = vsel %vm1215_vm7, %v1210_v36, %v1212_v21  ;;  %v1218_v9 = vsel %vm1215_vm7, %v1208_v19, %v1210_v36 }
 0x14a   :  { %v1236_v5 = vmul.f32 %v2437_v58, %v1218_v9  ;;  %v1237_v34 = vmul.f32 %v2438_v13, %v1217_v17 }
 0x14c   :  { %v1247_v63 = vrot.slane %v1236_v5, %v3477_v42  ;;  %v1251_v31 = vrot.slane %v1237_v34, %v3477_v42  ;;  %v1214_v47 = vpop.permute.xlu1 %1213  ;;  %v1275_v11 = vrot.slane %v1236_v5, %v3499_v53  ;;  %v1279_v6 = vrot.slane %v1237_v34, %v3499_v53 }
 0x14d   :  { %v1216_v29 = vsel %vm1215_vm7, %v1212_v21, %v1214_v47  ;;  %v1219_v18 = vsel %vm1215_vm7, %v1214_v47, %v1208_v19  ;;  %v1303_v48 = vrot.slane %v1236_v5, %v3519_v0  ;;  %v1307_v52 = vrot.slane %v1237_v34, %v3519_v0 }
 0x14e   :  { %v1238_v50 = vmul.f32 %v2439_v10, %v1216_v29  ;;  %v1239_v44 = vmul.f32 %v2440_v37, %v1219_v18  ;;  %v1260_v3 = vmul.f32 %v1247_v63, %v3981_v39  ;;  %v1261_v7 = vmul.f32 %v1251_v31, %v3981_v39  ;;  %v1539_v18 = vld [vmem:[#allocation5 + $0x188] sm:$0xff] }
 0x14f   :  { %v1288_v49 = vmul.f32 %v1275_v11, %v1270_v4  ;;  %v1289_v54 = vmul.f32 %v1279_v6, %v1270_v4  ;;  %v1331_v30 = vrot.slane %v1236_v5, %v3524_v8  ;;  %v1335_v61 = vrot.slane %v1237_v34, %v3524_v8  ;;  %v1506_v11 = vld [vmem:[#allocation5 + $0x80] sm:$0xff]  ;;  %v1507_v6 = vld [vmem:[#allocation5 + $0x88] sm:$0xff] }
 0x150   :  { %v1255_v45 = vrot.slane %v1238_v50, %v3477_v42  ;;  %v1259_v51 = vrot.slane %v1239_v44, %v3477_v42  ;;  %v1264_v15 = vadd.f32 %v1260_v3, %v1203_v2  ;;  %v1265_v56 = vadd.f32 %v1261_v7, %v1204_v40  ;;  %v1298_v59 = vpop.permute.xlu1 %1297  ;;  %v1522_v3 = vld [vmem:[#allocation5 + $0x100] sm:$0xff]  ;;  %v1523_v7 = vld [vmem:[#allocation5 + $0x108] sm:$0xff] }
 0x151   :  { %v1283_v46 = vrot.slane %v1238_v50, %v3499_v53  ;;  %v1287_v16 = vrot.slane %v1239_v44, %v3499_v53  ;;  %v1315_v14 = vrot.slane %v1239_v44, %v3519_v0  ;;  %v1311_v20 = vrot.slane %v1238_v50, %v3519_v0 }
 0x152   :  { %v1262_v41 = vmul.f32 %v1255_v45, %v3981_v39  ;;  %v1263_v35 = vmul.f32 %v1259_v51, %v3981_v39  ;;  %v1292_v19 = vadd.f32 %v1288_v49, %v1264_v15  ;;  %v1293_v60 = vadd.f32 %v1289_v54, %v1265_v56  ;;  %v1508_v49 = vld [vmem:[#allocation5 + $0x90] sm:$0xff]  ;;  %v1541_v45 = vld [vmem:[#allocation5 + $0x198] sm:$0xff] }
 0x153   :  { %v1290_v57 = vmul.f32 %v1283_v46, %v1270_v4  ;;  %v1291_v12 = vmul.f32 %v1287_v16, %v1270_v4  ;;  %v1316_v42 = vmul.f32 %v1303_v48, %v1298_v59  ;;  %v1317_v22 = vmul.f32 %v1307_v52, %v1298_v59  ;;  %v1538_v4 = vld [vmem:[#allocation5 + $0x180] sm:$0xff]  ;;  %v1491_v52 = vld [vmem:[#allocation5 + $0x8] sm:$0xff]  ;;  %v1493_v46 = vld [vmem:[#allocation5 + $0x18] sm:$0xff] }
 0x154   :  { %v1266_v1 = vadd.f32 %v1262_v41, %v1205_v55  ;;  %v1267_v25 = vadd.f32 %v1263_v35, %v1206_v23  ;;  %v1318_v26 = vmul.f32 %v1311_v20, %v1298_v59  ;;  %v1319_v33 = vmul.f32 %v1315_v14, %v1298_v59  ;;  %v1490_v48 = vld [vmem:[#allocation5] sm:$0xff]  ;;  %v1492_v59 = vld [vmem:[#allocation5 + $0x10] sm:$0xff]  ;;  %v1525_v20 = vld [vmem:[#allocation5 + $0x118] sm:$0xff] }
 0x155   :  { %v1320_v27 = vadd.f32 %v1316_v42, %v1292_v19  ;;  %v1321_v53 = vadd.f32 %v1317_v22, %v1293_v60  ;;  %v1343_v28 = vrot.slane %v1239_v44, %v3524_v8  ;;  %v1326_v58 = vpop.permute.xlu1 %1325  ;;  %v1339_v0 = vrot.slane %v1238_v50, %v3524_v8  ;;  %v1524_v16 = vld [vmem:[#allocation5 + $0x110] sm:$0xff]  ;;  %v1510_v41 = vld [vmem:[#allocation5 + $0xa0] sm:$0xff]  ;;  %v1511_v35 = vld [vmem:[#allocation5 + $0xa8] sm:$0xff] }
 0x156   :  { %v1294_v13 = vadd.f32 %v1290_v57, %v1266_v1  ;;  %v1295_v24 = vadd.f32 %v1291_v12, %v1267_v25  ;;  %v1344_v39 = vmul.f32 %v1331_v30, %v1326_v58  ;;  %v1345_v32 = vmul.f32 %v1335_v61, %v1326_v58  ;;  %v1509_v30 = vld [vmem:[#allocation5 + $0x98] sm:$0xff]  ;;  %v1540_v61 = vld [vmem:[#allocation5 + $0x190] sm:$0xff]  ;;  %v1542_v57 = vld [vmem:[#allocation5 + $0x1a0] sm:$0xff] }
 0x157   :  { %v1346_v21 = vmul.f32 %v1339_v0, %v1326_v58  ;;  %v1347_v36 = vmul.f32 %v1343_v28, %v1326_v58  ;;  %v2787_v29 = vpack.c.bf16 %v1507_v6, %v1506_v11  ;;  %v2819_v50 = vpack.c.bf16 %v1539_v18, %v1538_v4  ;;  %v1543_v12 = vld [vmem:[#allocation5 + $0x1a8] sm:$0xff]  ;;  %v1494_v42 = vld [vmem:[#allocation5 + $0x20] sm:$0xff]  ;;  %v1544_v28 = vld [vmem:[#allocation5 + $0x1b0] sm:$0xff] }
 0x158   :  { %v1322_v43 = vadd.f32 %v1318_v26, %v1294_v13  ;;  %v1323_v17 = vadd.f32 %v1319_v33, %v1295_v24  ;;  %v1348_v9 = vadd.f32 %v1344_v39, %v1320_v27  ;;  %v1349_v5 = vadd.f32 %v1345_v32, %v1321_v53  ;;  %v1495_v1 = vld [vmem:[#allocation5 + $0x28] sm:$0xff]  ;;  %v1526_v25 = vld [vmem:[#allocation5 + $0x120] sm:$0xff]  ;;  %v1512_v27 = vld [vmem:[#allocation5 + $0xb0] sm:$0xff] }
 0x159   :  { %v2789_v44 = vpack.c.bf16 %v1491_v52, %v1490_v48  ;;  %2788 = vmatprep.subr.bf16.mxu0 %v2787_v29  ;;  %v2821_v54 = vpack.c.bf16 %v1523_v7, %v1522_v3  ;;  %2820 = vmatprep.subr.bf16.mxu1 %v2819_v50  ;;  %v2791_v15 = vpack.c.bf16 %v1509_v30, %v1508_v49  ;;  %v1527_v26 = vld [vmem:[#allocation5 + $0x128] sm:$0xff]  ;;  %v1513_v53 = vld [vmem:[#allocation5 + $0xb8] sm:$0xff]  ;;  %v1496_v24 = vld [vmem:[#allocation5 + $0x30] sm:$0xff] }
 0x15a   :  { %v1350_v34 = vadd.f32 %v1346_v21, %v1322_v43  ;;  %v1351_v2 = vadd.f32 %v1347_v36, %v1323_v17  ;;  %v4020_v40 = vadd.f32 %v1355_v62, %v1348_v9  ;;  %v4022_v55 = vadd.f32 %v1355_v62, %v1349_v5  ;;  %v1545_v13 = vld [vmem:[#allocation5 + $0x1b8] sm:$0xff]  ;;  %v1528_v21 = vld [vmem:[#allocation5 + $0x130] sm:$0xff]  ;;  %v1515_v43 = vld [vmem:[#allocation5 + $0xc8] sm:$0xff] }
 0x15b   :  { %2790 = vmatpush3.bf16.msra.mxu0 %v2789_v44  ;;  %v2823_v56 = vpack.c.bf16 %v1541_v45, %v1540_v61  ;;  %2822 = vmatpush3.bf16.msra.mxu1 %v2821_v54  ;;  %v2793_v14 = vpack.c.bf16 %v1493_v46, %v1492_v59  ;;  %v2825_v19 = vpack.c.bf16 %v1525_v20, %v1524_v16  ;;  %v1497_v39 = vld [vmem:[#allocation5 + $0x38] sm:$0xff]  ;;  %v1546_v17 = vld [vmem:[#allocation5 + $0x1c0] sm:$0xff]  ;;  %v1547_v9 = vld [vmem:[#allocation5 + $0x1c8] sm:$0xff] }
 0x15c   :  { %v4024_v23 = vadd.f32 %v1355_v62, %v1350_v34  ;;  %v4026_v8 = vadd.f32 %v1355_v62, %v1351_v2  ;;  %v1361_v10 = vmax.f32 %v4020_v40, 0.0  ;;  %v1362_v37 = vmax.f32 %v4022_v55, 0.0  ;;  %2792 = vmatprep.subr.bf16.mxu0 %v2791_v15  ;;  %v1529_v36 = vld [vmem:[#allocation5 + $0x138] sm:$0xff]  ;;  %v1514_v62 = vld [vmem:[#allocation5 + $0xc0] sm:$0xff]  ;;  %v1499_v11 = vld [vmem:[#allocation5 + $0x48] sm:$0xff] }
 0x15d   :  { %v2795_v60 = vpack.c.bf16 %v1511_v35, %v1510_v41  ;;  %2824 = vmatprep.subr.bf16.mxu1 %v2823_v56  ;;  %v2827_v22 = vpack.c.bf16 %v1543_v12, %v1542_v57  ;;  %v2797_v33 = vpack.c.bf16 %v1495_v1, %v1494_v42  ;;  %v2829_v58 = vpack.c.bf16 %v1527_v26, %v1526_v25  ;;  %v1530_v6 = vld [vmem:[#allocation5 + $0x140] sm:$0xff]  ;;  %v1531_v29 = vld [vmem:[#allocation5 + $0x148] sm:$0xff]  ;;  %v1516_v18 = vld [vmem:[#allocation5 + $0xd0] sm:$0xff] }
 0x15e   :  { %v3158_v63 = vpack.i.bf16 %v1362_v37, %v1361_v10  ;;  %v1363_v31 = vmax.f32 %v4024_v23, 0.0  ;;  %v1364_v47 = vmax.f32 %v4026_v8, 0.0  ;;  %v2799_v0 = vpack.c.bf16 %v1513_v53, %v1512_v27  ;;  %v1517_v48 = vld [vmem:[#allocation5 + $0xd8] sm:$0xff]  ;;  %v1548_v52 = vld [vmem:[#allocation5 + $0x1d0] sm:$0xff]  ;;  %v1518_v16 = vld [vmem:[#allocation5 + $0xe0] sm:$0xff] }
 0x15f   :  { %2794 = vmatpush3.bf16.msra.mxu0 %v2793_v14  ;;  %2826 = vmatpush3.bf16.msra.mxu1 %v2825_v19  ;;  %v2831_v32 = vpack.c.bf16 %v1545_v13, %v1544_v28  ;;  %v2801_v5 = vpack.c.bf16 %v1497_v39, %v1496_v24  ;;  %v2833_v34 = vpack.c.bf16 %v1529_v36, %v1528_v21  ;;  %v1549_v50 = vld [vmem:[#allocation5 + $0x1d8] sm:$0xff]  ;;  %v1500_v49 = vld [vmem:[#allocation5 + $0x50] sm:$0xff]  ;;  %v1519_v14 = vld [vmem:[#allocation5 + $0xe8] sm:$0xff] }
 0x160   :  { %3159 = vrot.lane.b32.xlu1 %v3158_v63, %s3283_s17  ;;  %v3163_v51 = vpack.i.bf16 %v1363_v31, %v1364_v47  ;;  %2796 = vmatprep.subr.bf16.mxu0 %v2795_v60  ;;  %v2803_v2 = vpack.c.bf16 %v1515_v43, %v1514_v62  ;;  %v1498_v63 = vld [vmem:[#allocation5 + $0x40] sm:$0xff]  ;;  %v2835_v4 = vpack.c.bf16 %v1547_v9, %v1546_v17  ;;  %v1501_v54 = vld [vmem:[#allocation5 + $0x58] sm:$0xff]  ;;  %v1532_v61 = vld [vmem:[#allocation5 + $0x150] sm:$0xff] }
 0x161   :  { %2828 = vmatprep.subr.bf16.mxu1 %v2827_v22  ;;  %v2805_v44 = vpack.c.bf16 %v1499_v11, %v1498_v63  ;;  %v2837_v3 = vpack.c.bf16 %v1531_v29, %v1530_v6  ;;  %v2807_v7 = vpack.c.bf16 %v1517_v48, %v1516_v18  ;;  %v2839_v30 = vpack.c.bf16 %v1549_v50, %v1548_v52  ;;  %v1533_v45 = vld [vmem:[#allocation5 + $0x158] sm:$0xff]  ;;  %v1550_v20 = vld [vmem:[#allocation5 + $0x1e0] sm:$0xff]  ;;  %v1551_v35 = vld [vmem:[#allocation5 + $0x1e8] sm:$0xff] }
 0x162   :  { %v2841_v15 = vpack.c.bf16 %v1533_v45, %v1532_v61  ;;  %v2811_v41 = vpack.c.bf16 %v1519_v14, %v1518_v16  ;;  %v1502_v19 = vld [vmem:[#allocation5 + $0x60] sm:$0xff]  ;;  %v1503_v60 = vld [vmem:[#allocation5 + $0x68] sm:$0xff]  ;;  %v2843_v12 = vpack.c.bf16 %v1551_v35, %v1550_v20  ;;  %v1520_v25 = vld [vmem:[#allocation5 + $0xf0] sm:$0xff] }
 0x163   :  { %2798 = vmatpush3.bf16.msra.mxu0 %v2797_v33  ;;  %2830 = vmatpush3.bf16.msra.mxu1 %v2829_v58  ;;  %v2813_v42 = vpack.c.bf16 %v1503_v60, %v1502_v19  ;;  %v1534_v22 = vld [vmem:[#allocation5 + $0x160] sm:$0xff]  ;;  %v1535_v1 = vld [vmem:[#allocation5 + $0x168] sm:$0xff]  ;;  %v1521_v27 = vld [vmem:[#allocation5 + $0xf8] sm:$0xff] }
 0x164   :  { %3164 = vrot.lane.b32.xlu1 %v3163_v51, %s3283_s17  ;;  %2800 = vmatprep.subr.bf16.mxu0 %v2799_v0  ;;  %v2809_v51 = vpack.c.bf16 %v1501_v54, %v1500_v49  ;;  %v2845_v33 = vpack.c.bf16 %v1535_v1, %v1534_v22  ;;  %v1552_v53 = vld [vmem:[#allocation5 + $0x1f0] sm:$0xff]  ;;  %v1553_v28 = vld [vmem:[#allocation5 + $0x1f8] sm:$0xff]  ;;  %v2815_v13 = vpack.c.bf16 %v1521_v27, %v1520_v25  ;;  %v1602_v63 = vld [vmem:[#allocation5 + $0x380] sm:$0xff] }
 0x165   :  { %2832 = vmatprep.subr.bf16.mxu1 %v2831_v32  ;;  %v2847_v24 = vpack.c.bf16 %v1553_v28, %v1552_v53  ;;  %v1504_v39 = vld [vmem:[#allocation5 + $0x70] sm:$0xff]  ;;  %v1505_v32 = vld [vmem:[#allocation5 + $0x78] sm:$0xff]  ;;  %v1554_v50 = vld [vmem:[#allocation5 + $0x200] sm:$0xff] }
 0x166   :  { %v1536_v21 = vld [vmem:[#allocation5 + $0x170] sm:$0xff]  ;;  %v2817_v62 = vpack.c.bf16 %v1505_v32, %v1504_v39  ;;  %v1537_v43 = vld [vmem:[#allocation5 + $0x178] sm:$0xff] }
 0x167   :  { %2802 = vmatpush3.bf16.msra.mxu0 %v2801_v5  ;;  %2834 = vmatpush3.bf16.msra.mxu1 %v2833_v34  ;;  %v1570_v34 = vld [vmem:[#allocation5 + $0x280] sm:$0xff]  ;;  %v2849_v6 = vpack.c.bf16 %v1537_v43, %v1536_v21  ;;  %v1573_v14 = vld [vmem:[#allocation5 + $0x298] sm:$0xff]  ;;  %v1604_v20 = vld [vmem:[#allocation5 + $0x390] sm:$0xff] }
 0x168   :  { %2804 = vmatprep.subr.bf16.mxu0 %v2803_v2  ;;  %2836 = vmatprep.subr.bf16.mxu1 %v2835_v4  ;;  %v1571_v2 = vld [vmem:[#allocation5 + $0x288] sm:$0xff] }
 0x169   :  { %v1603_v4 = vld [vmem:[#allocation5 + $0x388] sm:$0xff]  ;;  %v2851_v29 = vpack.c.bf16 %v1571_v2, %v1570_v34 }
 0x16a   :  { %v2883_v18 = vpack.c.bf16 %v1603_v4, %v1602_v63  ;;  %v1607_v21 = vld [vmem:[#allocation5 + $0x3a8] sm:$0xff]  ;;  %v1577_v4 = vld [vmem:[#allocation5 + $0x2b8] sm:$0xff] }
 0x16b   :  { %2806 = vmatpush3.bf16.msra.mxu0 %v2805_v44  ;;  %2838 = vmatpush3.bf16.msra.mxu1 %v2837_v3  ;;  %v1555_v44 = vld [vmem:[#allocation5 + $0x208] sm:$0xff]  ;;  %v1586_v3 = vld [vmem:[#allocation5 + $0x300] sm:$0xff] }
 0x16c   :  { %2808 = vmatprep.subr.bf16.mxu0 %v2807_v7  ;;  %2840 = vmatprep.subr.bf16.mxu1 %v2839_v30  ;;  %v1587_v7 = vld [vmem:[#allocation5 + $0x308] sm:$0xff] }
 0x16d   :  { %v2885_v16 = vpack.c.bf16 %v1587_v7, %v1586_v3  ;;  %v1560_v7 = vld [vmem:[#allocation5 + $0x230] sm:$0xff] }
 0x16f   :  { %2810 = vmatpush3.bf16.msra.mxu0 %v2809_v51  ;;  %2842 = vmatpush3.bf16.msra.mxu1 %v2841_v15 }
 0x170   :  { %2812 = vmatprep.subr.bf16.mxu0 %v2811_v41  ;;  %2844 = vmatprep.subr.bf16.mxu1 %v2843_v12  ;;  %v1605_v41 = vld [vmem:[#allocation5 + $0x398] sm:$0xff] }
 0x171   :  { %v1557_v12 = vld [vmem:[#allocation5 + $0x218] sm:$0xff]  ;;  %v2887_v32 = vpack.c.bf16 %v1605_v41, %v1604_v20 }
 0x173   :  { %2814 = vmatpush3.bf16.msra.mxu0 %v2813_v42  ;;  %2846 = vmatpush3.bf16.msra.mxu1 %v2845_v33  ;;  %v1589_v33 = vld [vmem:[#allocation5 + $0x318] sm:$0xff] }
 0x174   :  { %2816 = vmatprep.subr.bf16.mxu0 %v2815_v13  ;;  %2848 = vmatprep.subr.bf16.mxu1 %v2847_v24  ;;  %v1575_v13 = vld [vmem:[#allocation5 + $0x2a8] sm:$0xff]  ;;  %v1606_v24 = vld [vmem:[#allocation5 + $0x3a0] sm:$0xff] }
 0x177   :  { %2818 = vmatpush3.bf16.msra.mxu0 %v2817_v62  ;;  %2850 = vmatpush3.bf16.msra.mxu1 %v2849_v6  ;;  %v1559_v62 = vld [vmem:[#allocation5 + $0x228] sm:$0xff]  ;;  %v1576_v6 = vld [vmem:[#allocation5 + $0x2b0] sm:$0xff] }
 0x178   :  { %2852 = vmatprep.subr.bf16.mxu0 %v2851_v29  ;;  %2884 = vmatprep.subr.bf16.mxu1 %v2883_v18  ;;  %v2863_v3 = vpack.c.bf16 %v1577_v4, %v1576_v6 }
 0x1d2   :  { %v3160_v56 = vpop.permute.xlu1 %3159 }
 0x1d3   :  { %v3162_v59 = vunpack.i.h.bf16 %v3160_v56  ;;  %v3161_v46 = vunpack.i.l.bf16 %v3160_v56 }
 0x1d5   :  { %v1375_v57 = vsel %vm780_vm4, %v3161_v46, %v3162_v59 }
 0x1d6   :  { %v3165_v26 = vpop.permute.xlu1 %3164  ;;  %v1377_v36 = vmax.f32 %v1361_v10, %v1375_v57  ;;  %v1556_v57 = vld [vmem:[#allocation5 + $0x210] sm:$0xff] }
 0x1d7   :  { %v3167_v58 = vunpack.i.h.bf16 %v3165_v26  ;;  %v3166_v0 = vunpack.i.l.bf16 %v3165_v26  ;;  %v1588_v26 = vld [vmem:[#allocation5 + $0x310] sm:$0xff]  ;;  %v2857_v43 = vpack.c.bf16 %v1557_v12, %v1556_v57  ;;  %v1611_v57 = vld [vmem:[#allocation5 + $0x3c8] sm:$0xff] }
 0x1d9   :  { %v1373_v17 = vsel %vm780_vm4, %v3167_v58, %v3166_v0  ;;  %v1374_v9 = vsel %vm780_vm4, %v3162_v59, %v3167_v58  ;;  %v1376_v5 = vsel %vm780_vm4, %v3166_v0, %v3161_v46  ;;  %v1572_v59 = vld [vmem:[#allocation5 + $0x290] sm:$0xff]  ;;  %v2853_v46 = vpack.c.bf16 %v1555_v44, %v1554_v50  ;;  %v1574_v0 = vld [vmem:[#allocation5 + $0x2a0] sm:$0xff] }
 0x1da   :  { %v1378_v40 = vmax.f32 %v1362_v37, %v1374_v9  ;;  %v1379_v10 = vmax.f32 %v1363_v31, %v1373_v17  ;;  %v1380_v11 = vmax.f32 %v1364_v47, %v1376_v5  ;;  %v2855_v39 = vpack.c.bf16 %v1573_v14, %v1572_v59  ;;  %v1590_v9 = vld [vmem:[#allocation5 + $0x320] sm:$0xff]  ;;  %v1591_v5 = vld [vmem:[#allocation5 + $0x328] sm:$0xff] }
 0x1db   :  { %v2889_v17 = vpack.c.bf16 %v1589_v33, %v1588_v26  ;;  %v2859_v63 = vpack.c.bf16 %v1575_v13, %v1574_v0  ;;  %v1578_v14 = vld [vmem:[#allocation5 + $0x2c0] sm:$0xff]  ;;  %v1563_v26 = vld [vmem:[#allocation5 + $0x248] sm:$0xff]  ;;  %v1612_v0 = vld [vmem:[#allocation5 + $0x3d0] sm:$0xff] }
 0x1dc   :  { %v3173_v48 = vpack.i.bf16 %v1378_v40, %v1379_v10  ;;  %v3168_v52 = vpack.i.bf16 %v1380_v11, %v1377_v36  ;;  %v1613_v13 = vld [vmem:[#allocation5 + $0x3d8] sm:$0xff] }
 0x1de   :  { %3174 = vrot.lane.b32.xlu1 %v3173_v48, %s3292_s19  ;;  %3169 = vrot.lane.b32.xlu0 %v3168_v52, %s3292_s19  ;;  %v2893_v48 = vpack.c.bf16 %v1591_v5, %v1590_v9  ;;  %v1608_v52 = vld [vmem:[#allocation5 + $0x3b0] sm:$0xff]  ;;  %v1582_v9 = vld [vmem:[#allocation5 + $0x2e0] sm:$0xff]  ;;  %v1583_v5 = vld [vmem:[#allocation5 + $0x2e8] sm:$0xff] }
 0x1df   :  { %v2875_v6 = vpack.c.bf16 %v1583_v5, %v1582_v9  ;;  %v1653_v5 = vld [vmem:[#allocation5 + $0x518] sm:$0xff] }
 0x250   :  { %v3175_v55 = vpop.permute.xlu1 %3174  ;;  %v3170_v23 = vpop.permute.xlu0 %3169 }
 0x251   :  { %v3177_v37 = vunpack.i.h.bf16 %v3175_v55  ;;  %v3176_v31 = vunpack.i.l.bf16 %v3175_v55  ;;  %v3172_v8 = vunpack.i.h.bf16 %v3170_v23  ;;  %v3171_v47 = vunpack.i.l.bf16 %v3170_v23  ;;  %v1609_v55 = vld [vmem:[#allocation5 + $0x3b8] sm:$0xff] }
 0x252   :  { %v2895_v59 = vpack.c.bf16 %v1609_v55, %v1608_v52  ;;  %v1585_v52 = vld [vmem:[#allocation5 + $0x2f8] sm:$0xff]  ;;  %v1616_v55 = vld [vmem:[#allocation5 + $0x3f0] sm:$0xff] }
 0x253   :  { %v1390_v49 = vsel %vm1070_vm6, %v3177_v37, %v3176_v31  ;;  %v1389_v54 = vsel %vm1070_vm6, %v3176_v31, %v3172_v8  ;;  %v1391_v30 = vsel %vm1070_vm6, %v3171_v47, %v3177_v37  ;;  %v1392_v61 = vsel %vm1070_vm6, %v3172_v8, %v3171_v47 }
 0x254   :  { %v4068_v45 = vmax.f32 %v1378_v40, %v1390_v49  ;;  %v4070_v51 = vmax.f32 %v1379_v10, %v1389_v54  ;;  %v4072_v15 = vmax.f32 %v1377_v36, %v1391_v30  ;;  %v4074_v56 = vmax.f32 %v1380_v11, %v1392_v61  ;;  %v1558_v36 = vld [vmem:[#allocation5 + $0x220] sm:$0xff]  ;;  %v1561_v49 = vld [vmem:[#allocation5 + $0x238] sm:$0xff] }
 0x255   :  { %v2891_v10 = vpack.c.bf16 %v1607_v21, %v1606_v24  ;;  %v2861_v11 = vpack.c.bf16 %v1559_v62, %v1558_v36  ;;  %v1565_v21 = vld [vmem:[#allocation5 + $0x258] sm:$0xff]  ;;  %v2903_v62 = vpack.c.bf16 %v1613_v13, %v1612_v0  ;;  %v1668_v0 = vld [vmem:[#allocation5 + $0x590] sm:$0xff] }
 0x256   :  { %v1442_v35 = vrot.slane %v4074_v56, 7  ;;  %v1400_v38 = vrot.slane %v4068_v45, 1  ;;  %v1441_v19 = vrot.slane %v4070_v51, 7  ;;  %v1399_v60 = vrot.slane %v4072_v15, 1  ;;  %v1669_v13 = vld [vmem:[#allocation5 + $0x598] sm:$0xff] }
 0x257   :  { %v1404_v42 = vrot.slane %v4068_v45, 2  ;;  %v2444_v22 = vrot.slane %v4074_v56, 9  ;;  %v1408_v1 = vrot.slane %v4068_v45, 3  ;;  %v2446_v25 = vrot.slane %v4074_v56, 10 }
 0x258   :  { %v1475_v27 = vsel %vm1473_vm8, %v4068_v45, %v1442_v35  ;;  %v1477_v53 = vsel %vm1473_vm8, %v1400_v38, %v4074_v56  ;;  %v1474_v28 = vsel %vm1473_vm8, %v4072_v15, %v1441_v19  ;;  %v1476_v58 = vsel %vm1473_vm8, %v1399_v60, %v4070_v51  ;;  %v1579_v38 = vld [vmem:[#allocation5 + $0x2c8] sm:$0xff]  ;;  %v1610_v60 = vld [vmem:[#allocation5 + $0x3c0] sm:$0xff] }
 0x259   :  { %1817 = vmatprep.mubr.f32.mxu0 %v1475_v27  ;;  %1887 = vmatprep.mubr.f32.mxu1 %v1477_v53  ;;  %v1479_v34 = vsel %vm1473_vm8, %v1404_v42, %v2444_v22  ;;  %v1481_v2 = vsel %vm1473_vm8, %v1408_v1, %v2446_v25  ;;  %v1411_v40 = vrot.slane %v4072_v15, 4  ;;  %v2447_v29 = vrot.slane %v4070_v51, 11  ;;  %v1562_v25 = vld [vmem:[#allocation5 + $0x240] sm:$0xff]  ;;  %v1595_v53 = vld [vmem:[#allocation5 + $0x348] sm:$0xff] }
 0x25a   :  { %1818 = vmatmul.mubr.f32.vlgmr.msra.gmra.mrb[0].mxu0 %v1474_v28  ;;  %1888 = vmatmul.mubr.f32.vlgmr.msra.gmra.mrb[0].mxu1 %v1476_v58  ;;  %v1415_v18 = vrot.slane %v4072_v15, 5  ;;  %v2449_v23 = vrot.slane %v4070_v51, 12  ;;  %v1420_v37 = vrot.slane %v4068_v45, 6  ;;  %v2452_v31 = vrot.slane %v4074_v56, 13  ;;  %v1580_v28 = vld [vmem:[#allocation5 + $0x2d0] sm:$0xff]  ;;  %v1581_v58 = vld [vmem:[#allocation5 + $0x2d8] sm:$0xff] }
 0x25b   :  { %2854 = vmatpush3.bf16.msra.mxu0 %v2853_v46  ;;  %2886 = vmatpush3.bf16.msra.mxu1 %v2885_v16  ;;  %v4103_v8 = vsel %vm1473_vm8, %v1411_v40, %v2447_v29  ;;  %v1424_v47 = vrot.slane %v4068_v45, 7  ;;  %v1456_v50 = vrot.slane %v1442_v35, 7  ;;  %v1419_v44 = vrot.slane %v4072_v15, 6  ;;  %v1592_v46 = vld [vmem:[#allocation5 + $0x330] sm:$0xff]  ;;  %v1593_v16 = vld [vmem:[#allocation5 + $0x338] sm:$0xff]  ;;  %v1598_v29 = vld [vmem:[#allocation5 + $0x360] sm:$0xff] }
 0x25c   :  { %1957 = vmatprep.mubr.f32.mxu0 %v1479_v34  ;;  %2027 = vmatprep.mubr.f32.mxu1 %v1481_v2  ;;  %v4108_v54 = vsel %vm1473_vm8, %v1415_v18, %v2449_v23  ;;  %v4111_v30 = vsel %vm1473_vm8, %v1420_v37, %v2452_v31  ;;  %v2451_v61 = vrot.slane %v4070_v51, 13  ;;  %v1423_v41 = vrot.slane %v4072_v15, 7  ;;  %v1614_v34 = vld [vmem:[#allocation5 + $0x3e0] sm:$0xff]  ;;  %v1615_v2 = vld [vmem:[#allocation5 + $0x3e8] sm:$0xff]  ;;  %v1617_v23 = vld [vmem:[#allocation5 + $0x3f8] sm:$0xff] }
 0x25d   :  { %2856 = vmatprep.subr.bf16.mxu0 %v2855_v39  ;;  %2888 = vmatprep.subr.bf16.mxu1 %v2887_v32  ;;  %v4115_v20 = vsel %vm1473_vm8, %v1424_v47, %v1456_v50  ;;  %v1455_v35 = vrot.slane %v1441_v19, 7  ;;  %v2865_v22 = vpack.c.bf16 %v1561_v49, %v1560_v7  ;;  %v2897_v1 = vpack.c.bf16 %v1593_v16, %v1592_v46  ;;  %v1594_v19 = vld [vmem:[#allocation5 + $0x340] sm:$0xff]  ;;  %v1564_v32 = vld [vmem:[#allocation5 + $0x250] sm:$0xff]  ;;  %v1599_v18 = vld [vmem:[#allocation5 + $0x368] sm:$0xff] }
 0x25e   :  { %v4121_v12 = vsel %vm1473_vm8, %v1419_v44, %v2451_v61  ;;  %v2867_v33 = vpack.c.bf16 %v1579_v38, %v1578_v14  ;;  %v2899_v27 = vpack.c.bf16 %v1611_v57, %v1610_v60  ;;  %v2869_v24 = vpack.c.bf16 %v1563_v26, %v1562_v25  ;;  %v1568_v47 = vld [vmem:[#allocation5 + $0x270] sm:$0xff]  ;;  %v1569_v50 = vld [vmem:[#allocation5 + $0x278] sm:$0xff]  ;;  %v1634_v61 = vld [vmem:[#allocation5 + $0x480] sm:$0xff] }
 0x25f   :  { %2858 = vmatpush3.bf16.msra.mxu0 %v2857_v43  ;;  %2890 = vmatpush3.bf16.msra.mxu1 %v2889_v17  ;;  %v4124_v42 = vsel %vm1473_vm8, %v1423_v41, %v1455_v35  ;;  %v2901_v39 = vpack.c.bf16 %v1595_v53, %v1594_v19  ;;  %v2871_v36 = vpack.c.bf16 %v1581_v58, %v1580_v28  ;;  %v1596_v43 = vld [vmem:[#allocation5 + $0x350] sm:$0xff]  ;;  %v1597_v17 = vld [vmem:[#allocation5 + $0x358] sm:$0xff]  ;;  %v1666_v46 = vld [vmem:[#allocation5 + $0x580] sm:$0xff]  ;;  %v2443_v25 = vrot.slane %v4070_v51, 9 }
 0x260   :  { %2860 = vmatprep.subr.bf16.mxu0 %v2859_v63  ;;  %2892 = vmatprep.subr.bf16.mxu1 %v2891_v10  ;;  %v2873_v63 = vpack.c.bf16 %v1565_v21, %v1564_v32  ;;  %v2905_v40 = vpack.c.bf16 %v1597_v17, %v1596_v43  ;;  %v1566_v10 = vld [vmem:[#allocation5 + $0x260] sm:$0xff]  ;;  %v2907_v4 = vpack.c.bf16 %v1615_v2, %v1614_v34  ;;  %v1600_v7 = vld [vmem:[#allocation5 + $0x370] sm:$0xff]  ;;  %v1601_v49 = vld [vmem:[#allocation5 + $0x378] sm:$0xff]  ;;  %v1407_v26 = vrot.slane %v4072_v15, 3 }
 0x261   :  { %v2909_v31 = vpack.c.bf16 %v1599_v18, %v1598_v29  ;;  %v1667_v16 = vld [vmem:[#allocation5 + $0x588] sm:$0xff]  ;;  %v2881_v14 = vpack.c.bf16 %v1569_v50, %v1568_v47  ;;  %v2913_v41 = vpack.c.bf16 %v1601_v49, %v1600_v7  ;;  %v1618_v60 = vld [vmem:[#allocation5 + $0x400] sm:$0xff]  ;;  %v1636_v19 = vld [vmem:[#allocation5 + $0x490] sm:$0xff]  ;;  %v1412_v53 = vrot.slane %v4068_v45, 4 }
 0x262   :  { %v2947_v38 = vpack.c.bf16 %v1667_v16, %v1666_v46  ;;  %v1619_v57 = vld [vmem:[#allocation5 + $0x408] sm:$0xff]  ;;  %v2448_v28 = vrot.slane %v4074_v56, 11  ;;  %v1637_v58 = vld [vmem:[#allocation5 + $0x498] sm:$0xff]  ;;  %v2450_v32 = vrot.slane %v4074_v56, 12  ;;  %v2951_v9 = vpack.c.bf16 %v1669_v13, %v1668_v0  ;;  %v1638_v34 = vld [vmem:[#allocation5 + $0x4a0] sm:$0xff] }
 0x263   :  { %2862 = vmatpush3.bf16.msra.mxu0 %v2861_v11  ;;  %2894 = vmatpush3.bf16.msra.mxu1 %v2893_v48  ;;  %v1567_v11 = vld [vmem:[#allocation5 + $0x268] sm:$0xff]  ;;  %v1584_v48 = vld [vmem:[#allocation5 + $0x2f0] sm:$0xff]  ;;  %v1621_v21 = vld [vmem:[#allocation5 + $0x418] sm:$0xff]  ;;  %v2919_v17 = vpack.c.bf16 %v1637_v58, %v1636_v19 }
 0x264   :  { %2864 = vmatprep.subr.bf16.mxu0 %v2863_v3  ;;  %2896 = vmatprep.subr.bf16.mxu1 %v2895_v59  ;;  %v2877_v37 = vpack.c.bf16 %v1567_v11, %v1566_v10  ;;  %v2879_v44 = vpack.c.bf16 %v1585_v52, %v1584_v48  ;;  %v2911_v3 = vpack.c.bf16 %v1617_v23, %v1616_v55  ;;  %v1635_v59 = vld [vmem:[#allocation5 + $0x488] sm:$0xff]  ;;  %v1670_v56 = vld [vmem:[#allocation5 + $0x5a0] sm:$0xff]  ;;  %v1640_v55 = vld [vmem:[#allocation5 + $0x4b0] sm:$0xff] }
 0x265   :  { %v2915_v35 = vpack.c.bf16 %v1635_v59, %v1634_v61  ;;  %v1639_v2 = vld [vmem:[#allocation5 + $0x4a8] sm:$0xff]  ;;  %v1654_v18 = vld [vmem:[#allocation5 + $0x520] sm:$0xff]  ;;  %v1641_v23 = vld [vmem:[#allocation5 + $0x4b8] sm:$0xff] }
 0x266   :  { %v1623_v29 = vld [vmem:[#allocation5 + $0x428] sm:$0xff]  ;;  %v1625_v7 = vld [vmem:[#allocation5 + $0x438] sm:$0xff]  ;;  %v1656_v49 = vld [vmem:[#allocation5 + $0x530] sm:$0xff] }
 0x267   :  { %2866 = vmatpush3.bf16.msra.mxu0 %v2865_v22  ;;  %2898 = vmatpush3.bf16.msra.mxu1 %v2897_v1  ;;  %v1650_v22 = vld [vmem:[#allocation5 + $0x500] sm:$0xff]  ;;  %v1403_v1 = vrot.slane %v4072_v15, 2  ;;  %v1655_v52 = vld [vmem:[#allocation5 + $0x528] sm:$0xff]  ;;  %v1657_v59 = vld [vmem:[#allocation5 + $0x538] sm:$0xff] }
 0x268   :  { %2868 = vmatprep.subr.bf16.mxu0 %v2867_v33  ;;  %2900 = vmatprep.subr.bf16.mxu1 %v2899_v27  ;;  %v2445_v33 = vrot.slane %v4070_v51, 10  ;;  %v1651_v27 = vld [vmem:[#allocation5 + $0x508] sm:$0xff]  ;;  %v1620_v51 = vld [vmem:[#allocation5 + $0x410] sm:$0xff]  ;;  %v2957_v50 = vpack.c.bf16 %v1655_v52, %v1654_v18  ;;  %v1642_v46 = vld [vmem:[#allocation5 + $0x4c0] sm:$0xff] }
 0x269   :  { %v2949_v15 = vpack.c.bf16 %v1651_v27, %v1650_v22  ;;  %v2921_v10 = vpack.c.bf16 %v1621_v21, %v1620_v51  ;;  %v1643_v16 = vld [vmem:[#allocation5 + $0x4c8] sm:$0xff]  ;;  %v1645_v27 = vld [vmem:[#allocation5 + $0x4d8] sm:$0xff]  ;;  %v1676_v19 = vld [vmem:[#allocation5 + $0x5d0] sm:$0xff] }
 0x26a   :  { %v1480_v43 = vsel %vm1473_vm8, %v1407_v26, %v2445_v33  ;;  %v1627_v22 = vld [vmem:[#allocation5 + $0x448] sm:$0xff]  ;;  %v1644_v33 = vld [vmem:[#allocation5 + $0x4d0] sm:$0xff]  ;;  %v1646_v51 = vld [vmem:[#allocation5 + $0x4e0] sm:$0xff] }
 0x26b   :  { %2870 = vmatpush3.bf16.msra.mxu0 %v2869_v24  ;;  %2902 = vmatpush3.bf16.msra.mxu1 %v2901_v39  ;;  %v2917_v24 = vpack.c.bf16 %v1619_v57, %v1618_v60  ;;  %v1416_v39 = vrot.slane %v4068_v45, 5  ;;  %v1483_v45 = vsel %vm1473_vm8, %v1412_v53, %v2448_v28  ;;  %v2931_v60 = vpack.c.bf16 %v1643_v16, %v1642_v46  ;;  %v1626_v57 = vld [vmem:[#allocation5 + $0x440] sm:$0xff]  ;;  %v1659_v26 = vld [vmem:[#allocation5 + $0x548] sm:$0xff]  ;;  %v1677_v53 = vld [vmem:[#allocation5 + $0x5d8] sm:$0xff] }
 0x26c   :  { %2872 = vmatprep.subr.bf16.mxu0 %v2871_v36  ;;  %2904 = vmatprep.subr.bf16.mxu1 %v2903_v62  ;;  %v1652_v36 = vld [vmem:[#allocation5 + $0x510] sm:$0xff]  ;;  %v1478_v62 = vsel %vm1473_vm8, %v1403_v1, %v2443_v25  ;;  %v1658_v1 = vld [vmem:[#allocation5 + $0x540] sm:$0xff]  ;;  %v2933_v28 = vpack.c.bf16 %v1627_v22, %v1626_v57  ;;  %v2935_v0 = vpack.c.bf16 %v1645_v27, %v1644_v33  ;;  %v1647_v21 = vld [vmem:[#allocation5 + $0x4e8] sm:$0xff] }
 0x26d   :  { %v2953_v11 = vpack.c.bf16 %v1653_v5, %v1652_v36  ;;  %v2965_v58 = vpack.c.bf16 %v1659_v26, %v1658_v1  ;;  %v1628_v13 = vld [vmem:[#allocation5 + $0x450] sm:$0xff]  ;;  %v1678_v36 = vld [vmem:[#allocation5 + $0x5e0] sm:$0xff]  ;;  %v1715_v16 = vld [vmem:[#allocation5 + $0x708] sm:$0xff] }
 0x26e   :  { %v1630_v5 = vld [vmem:[#allocation5 + $0x460] sm:$0xff]  ;;  %v1632_v18 = vld [vmem:[#allocation5 + $0x470] sm:$0xff]  ;;  %v1685_v1 = vld [vmem:[#allocation5 + $0x618] sm:$0xff] }
 0x26f   :  { %2874 = vmatpush3.bf16.msra.mxu0 %v2873_v63  ;;  %2906 = vmatpush3.bf16.msra.mxu1 %v2905_v40  ;;  %v1671_v63 = vld [vmem:[#allocation5 + $0x5a8] sm:$0xff]  ;;  %v1485_v40 = vsel %vm1473_vm8, %v1416_v39, %v2450_v32  ;;  %v1660_v39 = vld [vmem:[#allocation5 + $0x550] sm:$0xff]  ;;  %v2967_v32 = vpack.c.bf16 %v1677_v53, %v1676_v19  ;;  %v1714_v46 = vld [vmem:[#allocation5 + $0x700] sm:$0xff] }
 0x270   :  { %2876 = vmatprep.subr.bf16.mxu0 %v2875_v6  ;;  %2908 = vmatprep.subr.bf16.mxu1 %v2907_v4  ;;  %v2923_v6 = vpack.c.bf16 %v1639_v2, %v1638_v34  ;;  %v1622_v4 = vld [vmem:[#allocation5 + $0x420] sm:$0xff]  ;;  %v2955_v48 = vpack.c.bf16 %v1671_v63, %v1670_v56  ;;  %v1631_v34 = vld [vmem:[#allocation5 + $0x468] sm:$0xff]  ;;  %v1648_v63 = vld [vmem:[#allocation5 + $0x4f0] sm:$0xff]  ;;  %v3013_v57 = vpack.c.bf16 %v1715_v16, %v1714_v46 }
 0x271   :  { %v2925_v47 = vpack.c.bf16 %v1623_v29, %v1622_v4  ;;  %v1662_v2 = vld [vmem:[#allocation5 + $0x560] sm:$0xff]  ;;  %v1663_v56 = vld [vmem:[#allocation5 + $0x568] sm:$0xff]  ;;  %v1664_v52 = vld [vmem:[#allocation5 + $0x570] sm:$0xff] }
 0x272   :  { %v2973_v4 = vpack.c.bf16 %v1663_v56, %v1662_v2  ;;  %v1684_v22 = vld [vmem:[#allocation5 + $0x610] sm:$0xff]  ;;  %v1717_v33 = vld [vmem:[#allocation5 + $0x718] sm:$0xff]  ;;  %v1702_v27 = vld [vmem:[#allocation5 + $0x6a0] sm:$0xff] }
 0x273   :  { %2878 = vmatpush3.bf16.msra.mxu0 %v2877_v37  ;;  %2910 = vmatpush3.bf16.msra.mxu1 %v2909_v31  ;;  %v1672_v37 = vld [vmem:[#allocation5 + $0x5b0] sm:$0xff]  ;;  %v1673_v31 = vld [vmem:[#allocation5 + $0x5b8] sm:$0xff]  ;;  %v1703_v19 = vld [vmem:[#allocation5 + $0x6a8] sm:$0xff] }
 0x274   :  { %2880 = vmatprep.subr.bf16.mxu0 %v2879_v44  ;;  %2912 = vmatprep.subr.bf16.mxu1 %v2911_v3  ;;  %v2927_v44 = vpack.c.bf16 %v1641_v23, %v1640_v55  ;;  %v1624_v3 = vld [vmem:[#allocation5 + $0x430] sm:$0xff]  ;;  %v2959_v61 = vpack.c.bf16 %v1673_v31, %v1672_v37  ;;  %v1665_v23 = vld [vmem:[#allocation5 + $0x578] sm:$0xff]  ;;  %v1698_v37 = vld [vmem:[#allocation5 + $0x680] sm:$0xff] }
 0x275   :  { %v1699_v31 = vld [vmem:[#allocation5 + $0x688] sm:$0xff]  ;;  %v1710_v46 = vld [vmem:[#allocation5 + $0x6e0] sm:$0xff] }
 0x276   :  { %v1707_v56 = vld [vmem:[#allocation5 + $0x6c8] sm:$0xff] }
 0x277   :  { %2882 = vmatpush3.bf16.msra.mxu0 %v2881_v14  ;;  %2914 = vmatpush3.bf16.msra.mxu1 %v2913_v41  ;;  %v1674_v14 = vld [vmem:[#allocation5 + $0x5c0] sm:$0xff]  ;;  %v1675_v41 = vld [vmem:[#allocation5 + $0x5c8] sm:$0xff] }
 0x278   :  { %2916 = vmatprep.subr.bf16.mxu0 %v2915_v35  ;;  %2948 = vmatprep.subr.bf16.mxu1 %v2947_v38  ;;  %v2929_v35 = vpack.c.bf16 %v1625_v7, %v1624_v3  ;;  %v2961_v38 = vpack.c.bf16 %v1657_v59, %v1656_v49  ;;  %v2963_v25 = vpack.c.bf16 %v1675_v41, %v1674_v14  ;;  %v1682_v49 = vld [vmem:[#allocation5 + $0x600] sm:$0xff]  ;;  %v1700_v14 = vld [vmem:[#allocation5 + $0x690] sm:$0xff]  ;;  %v1701_v41 = vld [vmem:[#allocation5 + $0x698] sm:$0xff] }
 0x279   :  { %v2977_v3 = vpack.c.bf16 %v1665_v23, %v1664_v52  ;;  %v2979_v7 = vpack.c.bf16 %v1699_v31, %v1698_v37  ;;  %v2983_v26 = vpack.c.bf16 %v1701_v41, %v1700_v14  ;;  %v1723_v52 = vld [vmem:[#allocation5 + $0x748] sm:$0xff]  ;;  %v1709_v23 = vld [vmem:[#allocation5 + $0x6d8] sm:$0xff]  ;;  %v1740_v37 = vld [vmem:[#allocation5 + $0x7d0] sm:$0xff] }
 0x27a   :  { %1958 = vmatmul.mubr.f32.vlgmr.msra.gmra.mrb[2].mxu0 %v1478_v62  ;;  %2028 = vmatmul.mubr.f32.vlgmr.msra.gmra.mrb[2].mxu1 %v1480_v43  ;;  %v1679_v62 = vld [vmem:[#allocation5 + $0x5e8] sm:$0xff]  ;;  %v1741_v31 = vld [vmem:[#allocation5 + $0x7d8] sm:$0xff]  ;;  %v1742_v14 = vld [vmem:[#allocation5 + $0x7e0] sm:$0xff] }
 0x27b   :  { %2918 = vmatpush3.bf16.msra.mxu0 %v2917_v24  ;;  %2097 = vmatprep.mubr.f32.mxu0 %v1483_v45  ;;  %v1629_v24 = vld [vmem:[#allocation5 + $0x458] sm:$0xff]  ;;  %v2971_v45 = vpack.c.bf16 %v1679_v62, %v1678_v36  ;;  %v1736_v62 = vld [vmem:[#allocation5 + $0x7b0] sm:$0xff]  ;;  %v1711_v16 = vld [vmem:[#allocation5 + $0x6e8] sm:$0xff] }
 0x27c   :  { %2950 = vmatpush3.bf16.msra.mxu1 %v2949_v15  ;;  %2167 = vmatprep.mubr.f32.mxu1 %v1485_v40  ;;  %v1661_v15 = vld [vmem:[#allocation5 + $0x558] sm:$0xff]  ;;  %v2937_v43 = vpack.c.bf16 %v1629_v24, %v1628_v13  ;;  %v2987_v24 = vpack.c.bf16 %v1703_v19, %v1702_v27  ;;  %v1743_v41 = vld [vmem:[#allocation5 + $0x7e8] sm:$0xff]  ;;  %v1744_v19 = vld [vmem:[#allocation5 + $0x7f0] sm:$0xff] }
 0x27d   :  { %2920 = vmatprep.subr.bf16.mxu0 %v2919_v17  ;;  %2952 = vmatprep.subr.bf16.mxu1 %v2951_v9  ;;  %v2969_v17 = vpack.c.bf16 %v1661_v15, %v1660_v39  ;;  %v2939_v9 = vpack.c.bf16 %v1647_v21, %v1646_v51  ;;  %v1649_v40 = vld [vmem:[#allocation5 + $0x4f8] sm:$0xff]  ;;  %v1686_v39 = vld [vmem:[#allocation5 + $0x620] sm:$0xff]  ;;  %v1704_v21 = vld [vmem:[#allocation5 + $0x6b0] sm:$0xff] }
 0x27e   :  { %v2943_v29 = vpack.c.bf16 %v1649_v40, %v1648_v63  ;;  %v1718_v15 = vld [vmem:[#allocation5 + $0x720] sm:$0xff]  ;;  %v1705_v36 = vld [vmem:[#allocation5 + $0x6b8] sm:$0xff]  ;;  %v1739_v40 = vld [vmem:[#allocation5 + $0x7c8] sm:$0xff] }
 0x27f   :  { %2922 = vmatpush3.bf16.msra.mxu0 %v2921_v10  ;;  %v1680_v10 = vld [vmem:[#allocation5 + $0x5f0] sm:$0xff]  ;;  %v1738_v63 = vld [vmem:[#allocation5 + $0x7c0] sm:$0xff]  ;;  %v1713_v27 = vld [vmem:[#allocation5 + $0x6f8] sm:$0xff] }
 0x280   :  { %2954 = vmatpush3.bf16.msra.mxu1 %v2953_v11  ;;  %2924 = vmatprep.subr.bf16.mxu0 %v2923_v6  ;;  %v1681_v11 = vld [vmem:[#allocation5 + $0x5f8] sm:$0xff]  ;;  %v2941_v6 = vpack.c.bf16 %v1631_v34, %v1630_v5  ;;  %v1720_v34 = vld [vmem:[#allocation5 + $0x730] sm:$0xff] }
 0x281   :  { %2956 = vmatprep.subr.bf16.mxu1 %v2955_v48  ;;  %v1633_v48 = vld [vmem:[#allocation5 + $0x478] sm:$0xff]  ;;  %v2975_v55 = vpack.c.bf16 %v1681_v11, %v1680_v10 }
 0x282   :  { %v1689_v5 = vld [vmem:[#allocation5 + $0x638] sm:$0xff] }
 0x283   :  { %2926 = vmatpush3.bf16.msra.mxu0 %v2925_v47  ;;  %v1730_v47 = vld [vmem:[#allocation5 + $0x780] sm:$0xff] }
 0x284   :  { %2958 = vmatpush3.bf16.msra.mxu1 %v2957_v50  ;;  %2928 = vmatprep.subr.bf16.mxu0 %v2927_v44  ;;  %v1731_v50 = vld [vmem:[#allocation5 + $0x788] sm:$0xff]  ;;  %v2945_v44 = vpack.c.bf16 %v1633_v48, %v1632_v18  ;;  %v1722_v18 = vld [vmem:[#allocation5 + $0x740] sm:$0xff]  ;;  %v3027_v48 = vpack.c.bf16 %v1739_v40, %v1738_v63  ;;  %v2324_v63 = vld [vmem:[%s4219_s6 + $0x50] sm:$0xff] }
 0x285   :  { %2960 = vmatprep.subr.bf16.mxu1 %v2959_v61  ;;  %v1683_v61 = vld [vmem:[#allocation5 + $0x608] sm:$0xff]  ;;  %v3011_v59 = vpack.c.bf16 %v1731_v50, %v1730_v47  ;;  %v3029_v50 = vpack.c.bf16 %v1723_v52, %v1722_v18  ;;  %v2325_v40 = vld [vmem:[%s4219_s6 + $0x58] sm:$0xff] }
 0x286   :  { %v2329_v18 = vld [vmem:[%s4219_s6 + $0x78] sm:$0xff] }
 0x287   :  { %2930 = vmatpush3.bf16.msra.mxu0 %v2929_v35  ;;  %v2981_v35 = vpack.c.bf16 %v1683_v61, %v1682_v49  ;;  %v1724_v49 = vld [vmem:[#allocation5 + $0x750] sm:$0xff]  ;;  %v3031_v61 = vpack.c.bf16 %v1741_v31, %v1740_v37  ;;  %v2453_v37 = vld [vmem:[%s4218_s5] ss:$0 sm:$0xff] }
 0x288   :  { %2962 = vmatpush3.bf16.msra.mxu1 %v2961_v38  ;;  %2932 = vmatprep.subr.bf16.mxu0 %v2931_v60  ;;  %v1732_v38 = vld [vmem:[#allocation5 + $0x790] sm:$0xff]  ;;  %v1733_v60 = vld [vmem:[#allocation5 + $0x798] sm:$0xff] }
 0x289   :  { %2964 = vmatprep.subr.bf16.mxu1 %v2963_v25  ;;  %v1716_v25 = vld [vmem:[#allocation5 + $0x710] sm:$0xff]  ;;  %v3015_v53 = vpack.c.bf16 %v1733_v60, %v1732_v38  ;;  %v3003_v60 = vpack.c.bf16 %v1711_v16, %v1710_v46 }
 0x28a   :  { %v3017_v13 = vpack.c.bf16 %v1717_v33, %v1716_v25  ;;  %v3035_v25 = vpack.c.bf16 %v1743_v41, %v1742_v14  ;;  %v1712_v33 = vld [vmem:[#allocation5 + $0x6f0] sm:$0xff] }
 0x28b   :  { %2934 = vmatpush3.bf16.msra.mxu0 %v2933_v28  ;;  %v1734_v28 = vld [vmem:[#allocation5 + $0x7a0] sm:$0xff] }
 0x28c   :  { %2966 = vmatpush3.bf16.msra.mxu1 %v2965_v58  ;;  %2936 = vmatprep.subr.bf16.mxu0 %v2935_v0  ;;  %v1735_v58 = vld [vmem:[#allocation5 + $0x7a8] sm:$0xff]  ;;  %v2985_v0 = vpack.c.bf16 %v1685_v1, %v1684_v22  ;;  %v1726_v1 = vld [vmem:[#allocation5 + $0x760] sm:$0xff] }
 0x28d   :  { %2968 = vmatprep.subr.bf16.mxu1 %v2967_v32  ;;  %v1687_v32 = vld [vmem:[#allocation5 + $0x628] sm:$0xff]  ;;  %v3019_v51 = vpack.c.bf16 %v1735_v58, %v1734_v28 }
 0x28e   :  { %v1695_v22 = vld [vmem:[#allocation5 + $0x668] sm:$0xff] }
 0x28f   :  { %2938 = vmatpush3.bf16.msra.mxu0 %v2937_v43  ;;  %v2989_v43 = vpack.c.bf16 %v1687_v32, %v1686_v39  ;;  %v1728_v32 = vld [vmem:[#allocation5 + $0x770] sm:$0xff] }
 0x290   :  { %2970 = vmatpush3.bf16.msra.mxu1 %v2969_v17  ;;  %2940 = vmatprep.subr.bf16.mxu0 %v2939_v9  ;;  %v2991_v17 = vpack.c.bf16 %v1705_v36, %v1704_v21  ;;  %v1688_v9 = vld [vmem:[#allocation5 + $0x630] sm:$0xff]  ;;  %v2314_v21 = vld [vmem:[%s4219_s6] sm:$0xff]  ;;  %v2315_v36 = vld [vmem:[%s4219_s6 + $0x8] sm:$0xff] }
 0x291   :  { %2972 = vmatprep.subr.bf16.mxu1 %v2971_v45  ;;  %v1706_v45 = vld [vmem:[#allocation5 + $0x6c0] sm:$0xff]  ;;  %v2993_v10 = vpack.c.bf16 %v1689_v5, %v1688_v9  ;;  %v2320_v5 = vld [vmem:[%s4219_s6 + $0x30] sm:$0xff] }
 0x293   :  { %2942 = vmatpush3.bf16.msra.mxu0 %v2941_v6  ;;  %v2995_v6 = vpack.c.bf16 %v1707_v56, %v1706_v45  ;;  %v2323_v45 = vld [vmem:[%s4219_s6 + $0x48] sm:$0xff] }
 0x294   :  { %2974 = vmatpush3.bf16.msra.mxu1 %v2973_v4  ;;  %2944 = vmatprep.subr.bf16.mxu0 %v2943_v29  ;;  %v1690_v4 = vld [vmem:[#allocation5 + $0x640] sm:$0xff]  ;;  %v1691_v29 = vld [vmem:[#allocation5 + $0x648] sm:$0xff] }
 0x295   :  { %2976 = vmatprep.subr.bf16.mxu1 %v2975_v55  ;;  %v1708_v55 = vld [vmem:[#allocation5 + $0x6d0] sm:$0xff]  ;;  %v2997_v47 = vpack.c.bf16 %v1691_v29, %v1690_v4 }
 0x296   :  { %v2328_v4 = vld [vmem:[%s4219_s6 + $0x70] sm:$0xff] }
 0x297   :  { %2946 = vmatpush3.bf16.msra.mxu0 %v2945_v44  ;;  %v2999_v44 = vpack.c.bf16 %v1709_v23, %v1708_v55  ;;  %v3065_v52 = vpack.c.bf16 %v2329_v18, %v2328_v4 }
 0x298   :  { %2978 = vmatpush3.bf16.msra.mxu1 %v2977_v3  ;;  %2980 = vmatprep.subr.bf16.mxu0 %v2979_v7  ;;  %v1692_v3 = vld [vmem:[#allocation5 + $0x650] sm:$0xff]  ;;  %v1693_v7 = vld [vmem:[#allocation5 + $0x658] sm:$0xff] }
 0x299   :  { %3012 = vmatprep.subr.bf16.mxu1 %v3011_v59  ;;  %v1725_v59 = vld [vmem:[#allocation5 + $0x758] sm:$0xff] }
 0x29a   :  { %2098 = vmatmul.mubr.f32.vlgmr.msra.gmra.mrb[4].mxu0 %v4103_v8  ;;  %v1719_v8 = vld [vmem:[#allocation5 + $0x728] sm:$0xff]  ;;  %v3033_v38 = vpack.c.bf16 %v1725_v59, %v1724_v49 }
 0x29b   :  { %2168 = vmatmul.mubr.f32.vlgmr.msra.gmra.mrb[4].mxu1 %v4108_v54  ;;  %2982 = vmatpush3.bf16.msra.mxu0 %v2981_v35  ;;  %v1737_v54 = vld [vmem:[#allocation5 + $0x7b8] sm:$0xff]  ;;  %v3001_v35 = vpack.c.bf16 %v1693_v7, %v1692_v3 }
 0x29c   :  { %2237 = vmatprep.mubr.f32.mxu0 %v4111_v30  ;;  %3014 = vmatpush3.bf16.msra.mxu1 %v3013_v57  ;;  %v3021_v30 = vpack.c.bf16 %v1719_v8, %v1718_v15  ;;  %v3023_v2 = vpack.c.bf16 %v1737_v54, %v1736_v62  ;;  %v1694_v57 = vld [vmem:[#allocation5 + $0x660] sm:$0xff]  ;;  %v1729_v15 = vld [vmem:[#allocation5 + $0x778] sm:$0xff]  ;;  %v2316_v62 = vld [vmem:[%s4219_s6 + $0x10] sm:$0xff]  ;;  %v3306_v54 = vmov 0.0|0.0  }
 0x29d   :  { %2307 = vmatprep.mubr.f32.mxu1 %v4115_v20  ;;  %2984 = vmatprep.subr.bf16.mxu0 %v2983_v26  ;;  %v1721_v20 = vld [vmem:[#allocation5 + $0x738] sm:$0xff]  ;;  %v1727_v26 = vld [vmem:[#allocation5 + $0x768] sm:$0xff]  ;;  %v3005_v28 = vpack.c.bf16 %v1695_v22, %v1694_v57  ;;  %v3041_v8 = vpack.c.bf16 %v1729_v15, %v1728_v32  ;;  %v2454_v32 = vld [vmem:[%s4220_s7] ss:$0 sm:$0xff]  ;;  %s3228_s7 = scalar_lea.vmem %s2427_s28, 32 }
 0x29e   :  { %3016 = vmatprep.subr.bf16.mxu1 %v3015_v53  ;;  %v3025_v11 = vpack.c.bf16 %v1721_v20, %v1720_v34  ;;  %v1745_v53 = vld [vmem:[#allocation5 + $0x7f8] sm:$0xff]  ;;  %v3037_v58 = vpack.c.bf16 %v1727_v26, %v1726_v1  ;;  %v2322_v20 = vld [vmem:[%s4219_s6 + $0x40] sm:$0xff]  ;;  %p3229_p2 = scmp.ne.s32.totalorder %s2427_s28, %s3228_s7  ;;  %p3234_p4 = scmp.lt.s32.totalorder %s3228_s7, %s3228_s7 }
 0x29f   :  { %2986 = vmatpush3.bf16.msra.mxu0 %v2985_v0  ;;  %v3007_v0 = vpack.c.bf16 %v1713_v27, %v1712_v33  ;;  %v3039_v39 = vpack.c.bf16 %v1745_v53, %v1744_v19  ;;  %v2321_v34 = vld [vmem:[%s4219_s6 + $0x38] sm:$0xff]  ;;  %v3056_v56 = vpack.c.bf16 %v2323_v45, %v2322_v20 }
 0x2a0   :  { %3018 = vmatpush3.bf16.msra.mxu1 %v3017_v13  ;;  %2988 = vmatprep.subr.bf16.mxu0 %v2987_v24  ;;  %v1696_v13 = vld [vmem:[#allocation5 + $0x670] sm:$0xff]  ;;  %v1697_v24 = vld [vmem:[#allocation5 + $0x678] sm:$0xff]  ;;  %p3235_p5 = por %p3234_p4, %p3233_p3 }
 0x2a1   :  { %3020 = vmatprep.subr.bf16.mxu1 %v3019_v51  ;;  %v3009_v51 = vpack.c.bf16 %v1697_v24, %v1696_v13 }
 0x2a2   :  { %p3236_p6 = pnand %p3235_p5, %p3229_p2 }
 0x2a3   :  { %2990 = vmatpush3.bf16.msra.mxu0 %v2989_v43  ;;  %v3044_v43 = vpack.c.bf16 %v2315_v36, %v2314_v21 }
 0x2a4   :  { %3022 = vmatpush3.bf16.msra.mxu1 %v3021_v30  ;;  %2992 = vmatprep.subr.bf16.mxu0 %v2991_v17  ;;  %v2318_v30 = vld [vmem:[%s4219_s6 + $0x20] sm:$0xff]  ;;  %v2319_v17 = vld [vmem:[%s4219_s6 + $0x28] sm:$0xff] }
 0x2a5   :  { %3024 = vmatprep.subr.bf16.mxu1 %v3023_v2  ;;  %v3050_v9 = vpack.c.bf16 %v2319_v17, %v2318_v30  ;;  %v3053_v2 = vpack.c.bf16 %v2321_v34, %v2320_v5 }
 0x2a7   :  { %2994 = vmatpush3.bf16.msra.mxu0 %v2993_v10  ;;  %v3059_v10 = vpack.c.bf16 %v2325_v40, %v2324_v63 }
 0x2a8   :  { %3026 = vmatpush3.bf16.msra.mxu1 %v3025_v11  ;;  %2996 = vmatprep.subr.bf16.mxu0 %v2995_v6  ;;  %v2326_v11 = vld [vmem:[%s4219_s6 + $0x60] sm:$0xff]  ;;  %v2327_v6 = vld [vmem:[%s4219_s6 + $0x68] sm:$0xff] }
 0x2a9   :  { %3028 = vmatprep.subr.bf16.mxu1 %v3027_v48  ;;  %v3062_v29 = vpack.c.bf16 %v2327_v6, %v2326_v11  ;;  %v3308_v48 = vmov 0.0  }
 0x2ab   :  { %2998 = vmatpush3.bf16.msra.mxu0 %v2997_v47 }
 0x2ac   :  { %3030 = vmatpush3.bf16.msra.mxu1 %v3029_v50  ;;  %3000 = vmatprep.subr.bf16.mxu0 %v2999_v44 }
 0x2ad   :  { %3032 = vmatprep.subr.bf16.mxu1 %v3031_v61 }
 0x2af   :  { %3002 = vmatpush3.bf16.msra.mxu0 %v3001_v35 }
 0x2b0   :  { %3034 = vmatpush3.bf16.msra.mxu1 %v3033_v38  ;;  %3004 = vmatprep.subr.bf16.mxu0 %v3003_v60 }
 0x2b1   :  { %3036 = vmatprep.subr.bf16.mxu1 %v3035_v25 }
 0x2b3   :  { %3006 = vmatpush3.bf16.msra.mxu0 %v3005_v28 }
 0x2b4   :  { %3038 = vmatpush3.bf16.msra.mxu1 %v3037_v58  ;;  %3008 = vmatprep.subr.bf16.mxu0 %v3007_v0 }
 0x2b5   :  { %3040 = vmatprep.subr.bf16.mxu1 %v3039_v39 }
 0x2b7   :  { %3010 = vmatpush3.bf16.msra.mxu0 %v3009_v51 }
 0x2b8   :  { %3042 = vmatpush3.bf16.msra.mxu1 %v3041_v8  ;;  %3043 = vmatprep.subr.bf16.mxu0 %v3306_v54 }
 0x2ba   :  { %2238 = vmatmul.mubr.f32.vlgmr.msra.gmra.mrb[6].mxu0 %v4121_v12  ;;  %v2317_v12 = vld [vmem:[%s4219_s6 + $0x18] sm:$0xff] }
 0x2bb   :  { %2308 = vmatmul.mubr.f32.vlgmr.msra.gmra.mrb[6].mxu1 %v4124_v42  ;;  %3045 = vmatpush3.bf16.msra.mxu0 %v3044_v43  ;;  %v3047_v42 = vpack.c.bf16 %v2317_v12, %v2316_v62 }
 0x2bc   :  { %3046 = vmatprep.subr.bf16.mxu0 %v3306_v54  ;;  %2784 = vmatprep.mubr.msk.f32.mxu0 %vm3307_vm9, %v3308_v48 }
 0x2bf   :  { %3048 = vmatpush3.bf16.msra.mxu0 %v3047_v42 }
 0x2c0   :  { %3049 = vmatprep.subr.bf16.mxu0 %v3306_v54 }
 0x2c3   :  { %3051 = vmatpush3.bf16.msra.mxu0 %v3050_v9 }
 0x2c4   :  { %3052 = vmatprep.subr.bf16.mxu0 %v3306_v54 }
 0x2c7   :  { %3054 = vmatpush3.bf16.msra.mxu0 %v3053_v2 }
 0x2c8   :  { %3055 = vmatprep.subr.bf16.mxu0 %v3306_v54 }
 0x2cb   :  { %3057 = vmatpush3.bf16.msra.mxu0 %v3056_v56 }
 0x2cc   :  { %3058 = vmatprep.subr.bf16.mxu0 %v3306_v54 }
 0x2cf   :  { %3060 = vmatpush3.bf16.msra.mxu0 %v3059_v10 }
 0x2d0   :  { %3061 = vmatprep.subr.bf16.mxu0 %v3306_v54 }
 0x2d3   :  { %3063 = vmatpush3.bf16.msra.mxu0 %v3062_v29 }
 0x2d4   :  { %3064 = vmatprep.subr.bf16.mxu0 %v3306_v54 }
 0x2d7   :  { %3066 = vmatpush3.bf16.msra.mxu0 %v3065_v52 }
 0x32d   :  { %v2487_v55 = vpop.f32.mrb[0].mxu0  ;;  %v2522_v23 = vpop.f32.mrb[0].mxu1 }
 0x32e   :  { %v2488_v31 = vpop.f32.mrb[1].mxu0  ;;  %v2523_v47 = vpop.f32.mrb[1].mxu1 }
 0x32f   :  { %v2489_v50 = vadd.f32 %v2488_v31, %v2487_v55  ;;  %v2524_v44 = vadd.f32 %v2523_v47, %v2522_v23 }
 0x331   :  { %v1820_v3 = vadd.f32 %v2489_v50, %v2453_v37 }
 0x333   :  { %v1890_v7 = vadd.f32 %v2524_v44, %v1820_v3 }
 0x34d   :  { %v2557_v49 = vpop.f32.mrb[2].mxu0  ;;  %v2592_v61 = vpop.f32.mrb[2].mxu1 }
 0x34e   :  { %v2558_v59 = vpop.f32.mrb[3].mxu0  ;;  %v2593_v46 = vpop.f32.mrb[3].mxu1 }
 0x34f   :  { %v2559_v16 = vadd.f32 %v2558_v59, %v2557_v49  ;;  %v2594_v14 = vadd.f32 %v2593_v46, %v2592_v61 }
 0x351   :  { %v1960_v41 = vadd.f32 %v2559_v16, %v1890_v7 }
 0x353   :  { %v2030_v35 = vadd.f32 %v2594_v14, %v1960_v41 }
 0x36d   :  { %v2627_v38 = vpop.f32.mrb[4].mxu0 }
 0x36e   :  { %v2662_v60 = vpop.f32.mrb[4].mxu1  ;;  %v2628_v57 = vpop.f32.mrb[5].mxu0 }
 0x36f   :  { %v2629_v22 = vadd.f32 %v2628_v57, %v2627_v38  ;;  %v2663_v1 = vpop.f32.mrb[5].mxu1 }
 0x370   :  { %v2664_v25 = vadd.f32 %v2663_v1, %v2662_v60 }
 0x371   :  { %v2100_v26 = vadd.f32 %v2629_v22, %v2030_v35 }
 0x373   :  { %v2170_v33 = vadd.f32 %v2664_v25, %v2100_v26 }
 0x38d   :  { %v2697_v27 = vpop.f32.mrb[6].mxu0 }
 0x38e   :  { %v2732_v19 = vpop.f32.mrb[6].mxu1  ;;  %v2698_v53 = vpop.f32.mrb[7].mxu0 }
 0x38f   :  { %v2699_v28 = vadd.f32 %v2698_v53, %v2697_v27  ;;  %v2733_v58 = vpop.f32.mrb[7].mxu1 }
 0x390   :  { %v2734_v0 = vadd.f32 %v2733_v58, %v2732_v19 }
 0x391   :  { %v2240_v13 = vadd.f32 %v2699_v28, %v2170_v33 }
 0x393   :  { %v2310_v24 = vadd.f32 %v2734_v0, %v2240_v13 }
 0x395   :  { %v2313_v39 = vmax.f32 %v2310_v24, 0.0 }
 0x397   :  { %2785 = vmatmul.mubr.f32.vlgmr.msra.gmra.mrb[8].mxu0 %v2313_v39 }
 0x46a   :  { %v2403_v15 = vpop.f32.mrb[8].mxu0 }
 0x46b   :  { %v2404_v51 = vadd.f32 %v2454_v32, %v2403_v15  ;;  %v2786_v8 = vpop.f32.mrb[9].mxu0 }
 0x46d   :  { %v2408_v21 = vsel %vm2407_vm10, %v2404_v51, -inf }
 0x46e   :  { %2409 = vmax.xlane.f32.xlu0 %v2408_v21 }
 0x4fb   :  { %v2410_v36 = vpop.xlane.xlu0 %2409 }
 0x4fc   :  { %v2411_v62 = vsub.f32 %v2404_v51, %v2410_v36 }
 0x4fe   :  { %v2412_v54 = vmul.f32 1.442695, %v2411_v62 }
 0x500   :  { %3180 = vpow2.f32 %v2412_v54 }
 0x50a   :  { %v3181_v43 = vpop.eup %3180 }
 0x50b   :  { %v2414_v12 = vsel %vm2407_vm10, %v3181_v43, 0.0 }
 0x50c   :  { %2415 = vadd.xlane.f32.xlu1 %v2414_v12 }
 0x599   :  { %v2416_v42 = vpop.xlane.xlu1 %2415 }
 0x59a   :  { %3182 = vrcp.f32 %v2416_v42 }
 0x5a4   :  { %v3183_v30 = vpop.eup %3182 }
 0x5a5   :  { %v2418_v17 = vmul.f32 %v3183_v30, %v3181_v43 }
 0x5a7   :  { %2419 = vst.msk [vmem:[#allocation7] sm:$0x3] %vm2407_vm10, %v2418_v17 }
 0x5a8   :  { %3239 = shalt.err (!%p3236_p6)
}
 0x5a9   :  { %s3240_s10 = scalar_lea.hbm %s4221_s8, 32 }
 0x5aa   :  { %p3241_p7 = scmp.ne.s32.totalorder %s4221_s8, %s3240_s10  ;;  %p3244_p8 = scmp.lt.u32.totalorder %s3240_s10, %s4221_s8 }
 0x5ac   :  { %p3246_p9 = pnand %p3244_p8, %p3241_p7 }
 0x5ae   :  { %3249 = shalt.err (!%p3246_p9)
}
 0x5af   :  { %2429 = dma.vmem_to_hbm [thread:$0]  %s2427_s28, 32, %s4221_s8, [#allocation4]  }
 0x5b0   :  { %3254 = dma.done.wait [#allocation4], 32  }
 0x5b1   :  { %3255 = vsyncadd [#allocation4], 4294967264 }
 0x5b2   :  { %2433 = vsyncpa [#allocation3], 1 }
 0x5b3   :  { %2434 = vsyncpa [#allocation6], 1 }
 0x5b4   :  { %2435 = vsyncpa [#allocation4], 1 }

</bundles_post_ra>
